<compile_context>
chip_gen: v6e
topology: v6e:2x2x1
jax: 0.10.0
libtpu: 0.0.40
codegen_flags: <defaults>
</compile_context>

<pallas_src>
import numpy as np
import jax
import jax.numpy as jnp
from jax.experimental import pallas as pl
from jax.experimental.pallas import tpu as pltpu

# ------------------- config (mirrors args) -------------------
N_ENT, N_REL, EMB_DIM, KG_LAYER = 16, 4, 32, 2
COMP_OP = "mul"          # args.comp_op in {'add', 'mul'}
USE_BN = False           # args.bn for the GNN layers
PRED_REL_W = True        # args.pred_rel_w
K_H, K_W = 8, 4          # k_h * k_w == emb_dim
OUT_CHANNEL, KER_SZ = 8, 3
BN_EPS = 1e-5
N_EDGE = 24
BS = 2

H_IMG, W_IMG = 2 * K_H, K_W
H_OUT, W_OUT = H_IMG - KER_SZ + 1, W_IMG - KER_SZ + 1
FLAT_SZ = OUT_CHANNEL * H_OUT * W_OUT
assert K_H * K_W == EMB_DIM


# ------------------- kernel 1: fused GNN stack (all layers, all 3 sub-layers) -------------------
def gnn_stack_kernel(src_ref, dst_ref, rid_ref, ent0_ref, rel_ref, w_ref, relw_ref,
                     ent_out_ref, prel_out_ref):
    layer = pl.program_id(0)

    @pl.when(layer == 0)
    def _init():
        ent_out_ref[...] = ent0_ref[...]
        prel_out_ref[...] = jnp.zeros_like(prel_out_ref)

    ent = ent_out_ref[...]                       # (N, D)  carried across layers (resident)
    rel = rel_ref[0]                             # (2R, D) this layer's relation table

    e = dst_ref.shape[0]
    n = ent.shape[0]
    r2 = rel.shape[0]

    node_ids = jax.lax.broadcasted_iota(jnp.int32, (e, n), 1)
    rel_ids = jax.lax.broadcasted_iota(jnp.int32, (e, r2), 1)
    src_oh = (src_ref[...] == node_ids).astype(jnp.float32)      # (E, N)
    dst_oh = (dst_ref[...] == node_ids).astype(jnp.float32)      # (E, N)
    rid_oh = (rid_ref[...] == rel_ids).astype(jnp.float32)       # (E, 2R)

    # in-kernel gathers: ent[src], ent[dst], rel[rel_id]  (one-hot matmuls on the MXU)
    u_e = jnp.dot(src_oh, ent, preferred_element_type=jnp.float32)   # (E, D)
    v_e = jnp.dot(dst_oh, ent, preferred_element_type=jnp.float32)   # (E, D)
    r_e = jnp.dot(rid_oh, rel, preferred_element_type=jnp.float32)   # (E, D)

    def sub_layer(msg, w):
        # e_dot_v / u_dot_v  ->  per-edge logit
        logit = jnp.sum(msg * v_e, axis=1, keepdims=True)            # (E, 1)
        # dgl.ops.edge_softmax over destination nodes (masked softmax on dst incidence)
        masked = jnp.where(dst_oh > 0, logit, jnp.float32(-1e30))    # (E, N)
        colmax = jnp.max(masked, axis=0, keepdims=True)              # (1, N)
        p = jnp.where(dst_oh > 0, jnp.exp(masked - colmax), 0.0)
        denom = jnp.sum(p, axis=0, keepdims=True)                    # (1, N)
        alpha = p / jnp.maximum(denom, 1e-30)                        # (E, N)
        # update_all(copy_e / u_mul_e, sum)  ->  neigh[n] = sum_e alpha[e,n]*msg[e]
        neigh = jax.lax.dot_general(alpha, msg, (((0,), (0,)), ((), ())),
                                    preferred_element_type=jnp.float32)  # (N, D)
        return jnp.tanh(jnp.dot(neigh, w, preferred_element_type=jnp.float32))

    comp_msg = (u_e + r_e) if COMP_OP == "add" else (u_e * r_e)
    edge_out = sub_layer(r_e, w_ref[0, 0:EMB_DIM, :])
    node_out = sub_layer(u_e, w_ref[0, EMB_DIM:2 * EMB_DIM, :])
    comp_out = sub_layer(comp_msg, w_ref[0, 2 * EMB_DIM:3 * EMB_DIM, :])

    ent_out_ref[...] = ent + edge_out + node_out + comp_out
    # pred_rel accumulation: cat(rel_list, 1) @ rel_w == sum_l rel_l @ rel_w[l]
    prel_out_ref[...] = prel_out_ref[...] + jnp.dot(
        rel, relw_ref[0], preferred_element_type=jnp.float32)


def aggregate_emb(params, src, dst, rel_id):
    e = src.shape[0]
    src2 = src.reshape(e, 1).astype(jnp.int32)
    dst2 = dst.reshape(e, 1).astype(jnp.int32)
    rid2 = rel_id.reshape(e, 1).astype(jnp.int32)

    ent_out, prel_out = pl.pallas_call(
        gnn_stack_kernel,
        out_shape=(jax.ShapeDtypeStruct((N_ENT, EMB_DIM), jnp.float32),
                   jax.ShapeDtypeStruct((2 * N_REL, EMB_DIM), jnp.float32)),
        grid=(KG_LAYER,),
        in_specs=[
            pl.BlockSpec((e, 1), lambda l: (0, 0)),                         # src ids
            pl.BlockSpec((e, 1), lambda l: (0, 0)),                         # dst ids
            pl.BlockSpec((e, 1), lambda l: (0, 0)),                         # rel ids
            pl.BlockSpec((N_ENT, EMB_DIM), lambda l: (0, 0)),               # initial ent_emb
            pl.BlockSpec((1, 2 * N_REL, EMB_DIM), lambda l: (l, 0, 0)),     # rel table (layer l)
            pl.BlockSpec((1, 3 * EMB_DIM, EMB_DIM), lambda l: (l, 0, 0)),   # [edge;node;comp] W
            pl.BlockSpec((1, EMB_DIM, EMB_DIM), lambda l: (l, 0, 0)),       # rel_w slice (layer l)
        ],
        out_specs=(pl.BlockSpec((N_ENT, EMB_DIM), lambda l: (0, 0)),
                   pl.BlockSpec((2 * N_REL, EMB_DIM), lambda l: (0, 0))),
        compiler_params=pltpu.CompilerParams(dimension_semantics=("arbitrary",)),
    )(src2, dst2, rid2, params["ent_emb"], params["rel_embs"],
      params["gnn_w"], params["rel_w"])

    pred_rel = prel_out if PRED_REL_W else params["pred_rel_emb"]
    return ent_out, pred_rel


# ------------------- kernel 2: fused ConvE predictor -------------------
def conve_kernel(hid_ref, rid_ref, ent_ref, prel_ref, wc_ref, fc_ref, score_ref):
    ent = ent_ref[...]                           # (N, D)
    prel = prel_ref[...]                         # (2R, D)
    bs = hid_ref.shape[0]
    n = ent.shape[0]
    r2 = prel.shape[0]

    ent_ids = jax.lax.broadcasted_iota(jnp.int32, (bs, n), 1)
    rel_ids = jax.lax.broadcasted_iota(jnp.int32, (bs, r2), 1)
    h_oh = (hid_ref[...] == ent_ids).astype(jnp.float32)
    r_oh = (rid_ref[...] == rel_ids).astype(jnp.float32)
    head = jnp.dot(h_oh, ent, preferred_element_type=jnp.float32)    # (bs, D)
    rel = jnp.dot(r_oh, prel, preferred_element_type=jnp.float32)    # (bs, D)

    # image build + im2col + conv (+ folded bn0/bn1) as ONE matmul; output is NCHW-flat
    pre = (jnp.dot(head, wc_ref[0:EMB_DIM, :], preferred_element_type=jnp.float32)
           + jnp.dot(rel, wc_ref[EMB_DIM:2 * EMB_DIM, :], preferred_element_type=jnp.float32))
    feat = jnp.maximum(pre, 0.0)                                     # (bs, FLAT_SZ)

    # fc (+ folded bn2) + relu
    x = jnp.maximum(jnp.dot(feat, fc_ref[...], preferred_element_type=jnp.float32), 0.0)

    # score = sigmoid(x @ all_ent^T)  — transposed-B contraction, no host transpose
    logits = jax.lax.dot_general(x, ent, (((1,), (1,)), ((), ())),
                                 preferred_element_type=jnp.float32)  # (bs, N)
    score_ref[...] = jax.nn.sigmoid(logits)


def conve_score(params, ent_emb, pred_rel, h_id, r_id):
    bs = h_id.shape[0]
    hid2 = h_id.reshape(bs, 1).astype(jnp.int32)
    rid2 = r_id.reshape(bs, 1).astype(jnp.int32)
    return pl.pallas_call(
        conve_kernel,
        out_shape=jax.ShapeDtypeStruct((bs, N_ENT), jnp.float32),
        grid=(1,),
        in_specs=[
            pl.BlockSpec((bs, 1), lambda i: (0, 0)),
            pl.BlockSpec((bs, 1), lambda i: (0, 0)),
            pl.BlockSpec((N_ENT, EMB_DIM), lambda i: (0, 0)),
            pl.BlockSpec((2 * N_REL, EMB_DIM), lambda i: (0, 0)),
            pl.BlockSpec((2 * EMB_DIM, FLAT_SZ), lambda i: (0, 0)),
            pl.BlockSpec((FLAT_SZ, EMB_DIM), lambda i: (0, 0)),
        ],
        out_specs=pl.BlockSpec((bs, N_ENT), lambda i: (0, 0)),
        compiler_params=pltpu.CompilerParams(dimension_semantics=("arbitrary",)),
    )(hid2, rid2, ent_emb, pred_rel, params["conv_mat"], params["fc_mat"])


# ------------------- weight repacking (done once at init, not per call) -------------------
def _conv_as_matmul(conv_w):
    """Repack Conv2d(1, C, (k,k), valid) as a dense (H_IMG*W_IMG, C*H_OUT*W_OUT) matrix.
    Columns are in PyTorch NCHW-flat order (c, oh, ow) — i.e. exactly x.view(bs, -1)."""
    c, oh, ow, di, dj = np.meshgrid(
        np.arange(OUT_CHANNEL), np.arange(H_OUT), np.arange(W_OUT),
        np.arange(KER_SZ), np.arange(KER_SZ), indexing="ij")
    rows = ((oh + di) * W_IMG + (ow + dj)).reshape(-1)
    cols = (c * (H_OUT * W_OUT) + oh * W_OUT + ow).reshape(-1)
    vals = conv_w[c.reshape(-1), 0, di.reshape(-1), dj.reshape(-1)]
    return jnp.zeros((H_IMG * W_IMG, FLAT_SZ), jnp.float32).at[rows, cols].add(vals)


def fold_conve_weights(conv_w, fc_w):
    s = 1.0 / np.sqrt(1.0 + BN_EPS)                    # eval-mode BN with fresh stats
    a = _conv_as_matmul(conv_w) * jnp.float32(s * s)   # bn0 & bn1 folded into the conv
    # image flat index 2*d <- head[:, d]; 2*d+1 <- rel[:, d]
    # (cat([head, rel], 1).transpose(2, 1).reshape(-1, 1, 2*k_h, k_w) interleave)
    head_rows = np.arange(0, H_IMG * W_IMG, 2)
    rel_rows = np.arange(1, H_IMG * W_IMG, 2)
    conv_mat = jnp.concatenate([a[head_rows], a[rel_rows]], axis=0)  # (2*D, FLAT_SZ)
    fc_mat = fc_w * jnp.float32(s)                     # bn2 folded into fc
    return conv_mat, fc_mat


# ------------------- parameters (deterministic synthetic init) -------------------
def xavier_normal(key, shape):
    fan_in, fan_out = shape[-2], shape[-1]
    std = (2.0 / (fan_in + fan_out)) ** 0.5
    return std * jax.random.normal(key, shape, dtype=jnp.float32)


def init_params(key):
    ks = jax.random.split(key, 10)
    edge_w = xavier_normal(ks[2], (KG_LAYER, EMB_DIM, EMB_DIM))
    node_w = xavier_normal(ks[3], (KG_LAYER, EMB_DIM, EMB_DIM))
    comp_w = xavier_normal(ks[4], (KG_LAYER, EMB_DIM, EMB_DIM))
    conv_w = 0.1 * jax.random.normal(ks[6], (OUT_CHANNEL, 1, KER_SZ, KER_SZ), dtype=jnp.float32)
    fc_w = xavier_normal(ks[7], (FLAT_SZ, EMB_DIM))
    conv_mat, fc_mat = fold_conve_weights(conv_w, fc_w)
    params = {
        "ent_emb": xavier_normal(ks[0], (N_ENT, EMB_DIM)),
        "rel_embs": xavier_normal(ks[1], (KG_LAYER, 2 * N_REL, EMB_DIM)),
        # per-layer [edge_w; node_w; comp_w] stacked on the sublane axis -> (L, 3D, D)
        "gnn_w": jnp.concatenate([edge_w, node_w, comp_w], axis=1),
        # rel_w (D*L, D) split into per-layer (D, D) slices -> (L, D, D)
        "rel_w": xavier_normal(ks[5], (EMB_DIM * KG_LAYER, EMB_DIM)).reshape(
            KG_LAYER, EMB_DIM, EMB_DIM),
        "pred_rel_emb": xavier_normal(ks[8], (2 * N_REL, EMB_DIM)),
        # ConvE predictor weights, BN-folded and repacked as dense matmul operands
        "conv_mat": conv_mat,                                            # (2D, FLAT_SZ)
        "fc_mat": fc_mat,                                                # (FLAT_SZ, D)
    }
    return params


# ------------------- SEGNN forward -------------------
def segnn_forward(params, h_id, r_id, src, dst, rel_id):
    ent_emb, pred_rel = aggregate_emb(params, src, dst, rel_id)
    return conve_score(params, ent_emb, pred_rel, h_id, r_id)


# ------------------- main -------------------
if __name__ == "__main__":
    key = jax.random.PRNGKey(0)
    kp, kg1, kg2, kg3 = jax.random.split(key, 4)

    params = init_params(kp)

    # synthetic knowledge graph (E directed edges with relation ids)
    src = jax.random.randint(kg1, (N_EDGE,), 0, N_ENT, dtype=jnp.int32)
    dst = jax.random.randint(kg2, (N_EDGE,), 0, N_ENT, dtype=jnp.int32)
    rel_id = jax.random.randint(kg3, (N_EDGE,), 0, 2 * N_REL, dtype=jnp.int32)

    h_id = jnp.array([0, 3], dtype=jnp.int32)
    r_id = jnp.array([1, 5], dtype=jnp.int32)

    score = jax.jit(segnn_forward)(params, h_id, r_id, src, dst, rel_id)
    score = jax.block_until_ready(score)

    assert score.shape == (BS, N_ENT)
    assert bool(jnp.all(jnp.isfinite(score)))
    assert bool(jnp.all((score >= 0.0) & (score <= 1.0)))
    print("KERNEL_OK")
</pallas_src>

<mosaic_0001>
module attributes {stable_mosaic.version = 11 : i64} {
  func.func @gnn_stack_kernel(%arg0: i32, %arg1: memref<24x1xi32, #tpu.memory_space<vmem>>, %arg2: memref<24x1xi32, #tpu.memory_space<vmem>>, %arg3: memref<24x1xi32, #tpu.memory_space<vmem>>, %arg4: memref<16x32xf32, #tpu.memory_space<vmem>>, %arg5: memref<1x8x32xf32, #tpu.memory_space<vmem>>, %arg6: memref<1x96x32xf32, #tpu.memory_space<vmem>>, %arg7: memref<1x32x32xf32, #tpu.memory_space<vmem>>, %arg8: memref<16x32xf32, #tpu.memory_space<vmem>>, %arg9: memref<8x32xf32, #tpu.memory_space<vmem>>) attributes {dimension_semantics = [#tpu.dimension_semantics<arbitrary>], iteration_bounds = array<i64: 2>, scalar_prefetch = 0 : i64, scratch_operands = 0 : i64, tpu.core_type = #tpu.core_type<tc>, window_params = [{pipeline_mode = #tpu.pipeline_mode<synchronous>, transform_indices = @transform_0, window_bounds = array<i64: 24, 1>}, {pipeline_mode = #tpu.pipeline_mode<synchronous>, transform_indices = @transform_1, window_bounds = array<i64: 24, 1>}, {pipeline_mode = #tpu.pipeline_mode<synchronous>, transform_indices = @transform_2, window_bounds = array<i64: 24, 1>}, {pipeline_mode = #tpu.pipeline_mode<synchronous>, transform_indices = @transform_3, window_bounds = array<i64: 16, 32>}, {transform_indices = @transform_4, window_bounds = array<i64: 1, 8, 32>}, {transform_indices = @transform_5, window_bounds = array<i64: 1, 96, 32>}, {transform_indices = @transform_6, window_bounds = array<i64: 1, 32, 32>}, {pipeline_mode = #tpu.pipeline_mode<synchronous>, transform_indices = @transform_7, window_bounds = array<i64: 16, 32>}, {pipeline_mode = #tpu.pipeline_mode<synchronous>, transform_indices = @transform_8, window_bounds = array<i64: 8, 32>}]} {
    %c0_i32 = arith.constant 0 : i32
    %0 = arith.cmpi eq, %arg0, %c0_i32 : i32
    %1 = arith.extui %0 : i1 to i32
    %c0_i32_0 = arith.constant 0 : i32
    %2 = arith.cmpi ne, %1, %c0_i32_0 : i32
    scf.if %2 {
      %c0_60 = arith.constant 0 : index
      %c0_61 = arith.constant 0 : index
      %124 = vector.load %arg4[%c0_60, %c0_61] : memref<16x32xf32, #tpu.memory_space<vmem>>, vector<16x32xf32>
      %c0_62 = arith.constant 0 : index
      %c0_63 = arith.constant 0 : index
      %125 = vector.load %arg8[%c0_62, %c0_63] : memref<16x32xf32, #tpu.memory_space<vmem>>, vector<16x32xf32>
      tpu.vector_store %arg8[%c0_62, %c0_63], %124 {strides = array<i32>} : memref<16x32xf32, #tpu.memory_space<vmem>>, vector<16x32xf32>,
      %cst_64 = arith.constant 0.000000e+00 : f32
      %126 = vector.broadcast %cst_64 : f32 to vector<8x32xf32>
      %c0_65 = arith.constant 0 : index
      %c0_66 = arith.constant 0 : index
      %127 = vector.load %arg9[%c0_65, %c0_66] : memref<8x32xf32, #tpu.memory_space<vmem>>, vector<8x32xf32>
      tpu.vector_store %arg9[%c0_65, %c0_66], %126 {strides = array<i32>} : memref<8x32xf32, #tpu.memory_space<vmem>>, vector<8x32xf32>,
    } else {
    }
    %c0 = arith.constant 0 : index
    %c0_1 = arith.constant 0 : index
    %3 = vector.load %arg8[%c0, %c0_1] : memref<16x32xf32, #tpu.memory_space<vmem>>, vector<16x32xf32>
    %c0_2 = arith.constant 0 : index
    %c0_3 = arith.constant 0 : index
    %c0_4 = arith.constant 0 : index
    %4 = vector.load %arg5[%c0_2, %c0_3, %c0_4] : memref<1x8x32xf32, #tpu.memory_space<vmem>>, vector<1x8x32xf32>
    %5 = vector.shape_cast %4 : vector<1x8x32xf32> to vector<8x32xf32>
    %6 = tpu.iota {dimensions = array<i32: 1>} : vector<24x16xi32>
    %7 = tpu.iota {dimensions = array<i32: 1>} : vector<24x8xi32>
    %c0_5 = arith.constant 0 : index
    %c0_6 = arith.constant 0 : index
    %8 = vector.load %arg1[%c0_5, %c0_6] : memref<24x1xi32, #tpu.memory_space<vmem>>, vector<24x1xi32>
    %9 = vector.broadcast %8 : vector<24x1xi32> to vector<24x16xi32>
    %10 = arith.cmpi eq, %9, %6 : vector<24x16xi32>
    %11 = arith.extui %10 : vector<24x16xi1> to vector<24x16xi32>
    %12 = arith.sitofp %11 : vector<24x16xi32> to vector<24x16xf32>
    %c0_7 = arith.constant 0 : index
    %c0_8 = arith.constant 0 : index
    %13 = vector.load %arg2[%c0_7, %c0_8] : memref<24x1xi32, #tpu.memory_space<vmem>>, vector<24x1xi32>
    %14 = vector.broadcast %13 : vector<24x1xi32> to vector<24x16xi32>
    %15 = arith.cmpi eq, %14, %6 : vector<24x16xi32>
    %16 = arith.extui %15 : vector<24x16xi1> to vector<24x16xi32>
    %17 = arith.sitofp %16 : vector<24x16xi32> to vector<24x16xf32>
    %c0_9 = arith.constant 0 : index
    %c0_10 = arith.constant 0 : index
    %18 = vector.load %arg3[%c0_9, %c0_10] : memref<24x1xi32, #tpu.memory_space<vmem>>, vector<24x1xi32>
    %19 = vector.broadcast %18 : vector<24x1xi32> to vector<24x8xi32>
    %20 = arith.cmpi eq, %19, %7 : vector<24x8xi32>
    %21 = arith.extui %20 : vector<24x8xi1> to vector<24x8xi32>
    %22 = arith.sitofp %21 : vector<24x8xi32> to vector<24x8xf32>
    %cst = arith.constant dense<0.000000e+00> : vector<24x32xf32>
    %23 = tpu.matmul %12, %3, %cst {dimension_numbers = #tpu.dot_dimension_numbers<[1], [0], [0], [1], [0, 0, 1, 1], [], []>} : vector<24x16xf32>, vector<16x32xf32>, vector<24x32xf32> -> vector<24x32xf32>
    %cst_11 = arith.constant dense<0.000000e+00> : vector<24x32xf32>
    %24 = tpu.matmul %17, %3, %cst_11 {dimension_numbers = #tpu.dot_dimension_numbers<[1], [0], [0], [1], [0, 0, 1, 1], [], []>} : vector<24x16xf32>, vector<16x32xf32>, vector<24x32xf32> -> vector<24x32xf32>
    %cst_12 = arith.constant dense<0.000000e+00> : vector<24x32xf32>
    %25 = tpu.matmul %22, %5, %cst_12 {dimension_numbers = #tpu.dot_dimension_numbers<[1], [0], [0], [1], [0, 0, 1, 1], [], []>} : vector<24x8xf32>, vector<8x32xf32>, vector<24x32xf32> -> vector<24x32xf32>
    %26 = arith.mulf %23, %25 : vector<24x32xf32>
    %c0_13 = arith.constant 0 : index
    %c0_14 = arith.constant 0 : index
    %c0_15 = arith.constant 0 : index
    %27 = vector.load %arg6[%c0_13, %c0_14, %c0_15] : memref<1x96x32xf32, #tpu.memory_space<vmem>>, vector<1x32x32xf32>
    %28 = vector.shape_cast %27 : vector<1x32x32xf32> to vector<32x32xf32>
    %29 = arith.mulf %25, %24 : vector<24x32xf32>
    %cst_16 = arith.constant dense<0.000000e+00> : vector<24xf32>
    %30 = vector.multi_reduction <add>, %29, %cst_16 [1] : vector<24x32xf32> to vector<24xf32>
    %31 = vector.shape_cast %30 : vector<24xf32> to vector<24x1xf32>
    %cst_17 = arith.constant 0.000000e+00 : f32
    %32 = vector.broadcast %cst_17 : f32 to vector<24x16xf32>
    %33 = arith.cmpf ogt, %17, %32 : vector<24x16xf32>
    %cst_18 = arith.constant -1.000000e+30 : f32
    %34 = vector.shape_cast %31 : vector<24x1xf32> to vector<24x1xf32>
    %35 = vector.broadcast %34 : vector<24x1xf32> to vector<24x16xf32>
    %36 = vector.broadcast %cst_18 : f32 to vector<24x16xf32>
    %37 = arith.select %33, %35, %36 : vector<24x16xi1>, vector<24x16xf32>
    %cst_19 = arith.constant dense<0xFF800000> : vector<16xf32>
    %38 = vector.multi_reduction <maximumf>, %37, %cst_19 [0] : vector<24x16xf32> to vector<16xf32>
    %39 = vector.shape_cast %38 : vector<16xf32> to vector<1x16xf32>
    %cst_20 = arith.constant 0.000000e+00 : f32
    %40 = vector.broadcast %cst_20 : f32 to vector<24x16xf32>
    %41 = arith.cmpf ogt, %17, %40 : vector<24x16xf32>
    %42 = vector.broadcast %39 : vector<1x16xf32> to vector<24x16xf32>
    %43 = arith.subf %37, %42 : vector<24x16xf32>
    %44 = math.exp %43 : vector<24x16xf32>
    %cst_21 = arith.constant 0.000000e+00 : f32
    %45 = vector.broadcast %cst_21 : f32 to vector<24x16xf32>
    %46 = arith.select %41, %44, %45 : vector<24x16xi1>, vector<24x16xf32>
    %cst_22 = arith.constant dense<0.000000e+00> : vector<16xf32>
    %47 = vector.multi_reduction <add>, %46, %cst_22 [0] : vector<24x16xf32> to vector<16xf32>
    %48 = vector.shape_cast %47 : vector<16xf32> to vector<1x16xf32>
    %cst_23 = arith.constant 1.000000e-30 : f32
    %49 = vector.broadcast %cst_23 : f32 to vector<1x16xf32>
    %50 = arith.maximumf %48, %49 : vector<1x16xf32>
    %51 = vector.broadcast %50 : vector<1x16xf32> to vector<24x16xf32>
    %52 = arith.divf %46, %51 : vector<24x16xf32>
    %cst_24 = arith.constant dense<0.000000e+00> : vector<16x32xf32>
    %53 = tpu.matmul %52, %25, %cst_24 {dimension_numbers = #tpu.dot_dimension_numbers<[0], [0], [1], [1], [0, 1, 1, 1], [], []>} : vector<24x16xf32>, vector<24x32xf32>, vector<16x32xf32> -> vector<16x32xf32>
    %cst_25 = arith.constant dense<0.000000e+00> : vector<16x32xf32>
    %54 = tpu.matmul %53, %28, %cst_25 {dimension_numbers = #tpu.dot_dimension_numbers<[1], [0], [0], [1], [0, 0, 1, 1], [], []>} : vector<16x32xf32>, vector<32x32xf32>, vector<16x32xf32> -> vector<16x32xf32>
    %55 = math.tanh %54 : vector<16x32xf32>
    %c0_26 = arith.constant 0 : index
    %c32 = arith.constant 32 : index
    %c0_27 = arith.constant 0 : index
    %56 = vector.load %arg6[%c0_26, %c32, %c0_27] : memref<1x96x32xf32, #tpu.memory_space<vmem>>, vector<1x32x32xf32>
    %57 = vector.shape_cast %56 : vector<1x32x32xf32> to vector<32x32xf32>
    %58 = arith.mulf %23, %24 : vector<24x32xf32>
    %cst_28 = arith.constant dense<0.000000e+00> : vector<24xf32>
    %59 = vector.multi_reduction <add>, %58, %cst_28 [1] : vector<24x32xf32> to vector<24xf32>
    %60 = vector.shape_cast %59 : vector<24xf32> to vector<24x1xf32>
    %cst_29 = arith.constant 0.000000e+00 : f32
    %61 = vector.broadcast %cst_29 : f32 to vector<24x16xf32>
    %62 = arith.cmpf ogt, %17, %61 : vector<24x16xf32>
    %cst_30 = arith.constant -1.000000e+30 : f32
    %63 = vector.shape_cast %60 : vector<24x1xf32> to vector<24x1xf32>
    %64 = vector.broadcast %63 : vector<24x1xf32> to vector<24x16xf32>
    %65 = vector.broadcast %cst_30 : f32 to vector<24x16xf32>
    %66 = arith.select %62, %64, %65 : vector<24x16xi1>, vector<24x16xf32>
    %cst_31 = arith.constant dense<0xFF800000> : vector<16xf32>
    %67 = vector.multi_reduction <maximumf>, %66, %cst_31 [0] : vector<24x16xf32> to vector<16xf32>
    %68 = vector.shape_cast %67 : vector<16xf32> to vector<1x16xf32>
    %cst_32 = arith.constant 0.000000e+00 : f32
    %69 = vector.broadcast %cst_32 : f32 to vector<24x16xf32>
    %70 = arith.cmpf ogt, %17, %69 : vector<24x16xf32>
    %71 = vector.broadcast %68 : vector<1x16xf32> to vector<24x16xf32>
    %72 = arith.subf %66, %71 : vector<24x16xf32>
    %73 = math.exp %72 : vector<24x16xf32>
    %cst_33 = arith.constant 0.000000e+00 : f32
    %74 = vector.broadcast %cst_33 : f32 to vector<24x16xf32>
    %75 = arith.select %70, %73, %74 : vector<24x16xi1>, vector<24x16xf32>
    %cst_34 = arith.constant dense<0.000000e+00> : vector<16xf32>
    %76 = vector.multi_reduction <add>, %75, %cst_34 [0] : vector<24x16xf32> to vector<16xf32>
    %77 = vector.shape_cast %76 : vector<16xf32> to vector<1x16xf32>
    %cst_35 = arith.constant 1.000000e-30 : f32
    %78 = vector.broadcast %cst_35 : f32 to vector<1x16xf32>
    %79 = arith.maximumf %77, %78 : vector<1x16xf32>
    %80 = vector.broadcast %79 : vector<1x16xf32> to vector<24x16xf32>
    %81 = arith.divf %75, %80 : vector<24x16xf32>
    %cst_36 = arith.constant dense<0.000000e+00> : vector<16x32xf32>
    %82 = tpu.matmul %81, %23, %cst_36 {dimension_numbers = #tpu.dot_dimension_numbers<[0], [0], [1], [1], [0, 1, 1, 1], [], []>} : vector<24x16xf32>, vector<24x32xf32>, vector<16x32xf32> -> vector<16x32xf32>
    %cst_37 = arith.constant dense<0.000000e+00> : vector<16x32xf32>
    %83 = tpu.matmul %82, %57, %cst_37 {dimension_numbers = #tpu.dot_dimension_numbers<[1], [0], [0], [1], [0, 0, 1, 1], [], []>} : vector<16x32xf32>, vector<32x32xf32>, vector<16x32xf32> -> vector<16x32xf32>
    %84 = math.tanh %83 : vector<16x32xf32>
    %c0_38 = arith.constant 0 : index
    %c64 = arith.constant 64 : index
    %c0_39 = arith.constant 0 : index
    %85 = vector.load %arg6[%c0_38, %c64, %c0_39] : memref<1x96x32xf32, #tpu.memory_space<vmem>>, vector<1x32x32xf32>
    %86 = vector.shape_cast %85 : vector<1x32x32xf32> to vector<32x32xf32>
    %87 = arith.mulf %26, %24 : vector<24x32xf32>
    %cst_40 = arith.constant dense<0.000000e+00> : vector<24xf32>
    %88 = vector.multi_reduction <add>, %87, %cst_40 [1] : vector<24x32xf32> to vector<24xf32>
    %89 = vector.shape_cast %88 : vector<24xf32> to vector<24x1xf32>
    %cst_41 = arith.constant 0.000000e+00 : f32
    %90 = vector.broadcast %cst_41 : f32 to vector<24x16xf32>
    %91 = arith.cmpf ogt, %17, %90 : vector<24x16xf32>
    %cst_42 = arith.constant -1.000000e+30 : f32
    %92 = vector.shape_cast %89 : vector<24x1xf32> to vector<24x1xf32>
    %93 = vector.broadcast %92 : vector<24x1xf32> to vector<24x16xf32>
    %94 = vector.broadcast %cst_42 : f32 to vector<24x16xf32>
    %95 = arith.select %91, %93, %94 : vector<24x16xi1>, vector<24x16xf32>
    %cst_43 = arith.constant dense<0xFF800000> : vector<16xf32>
    %96 = vector.multi_reduction <maximumf>, %95, %cst_43 [0] : vector<24x16xf32> to vector<16xf32>
    %97 = vector.shape_cast %96 : vector<16xf32> to vector<1x16xf32>
    %cst_44 = arith.constant 0.000000e+00 : f32
    %98 = vector.broadcast %cst_44 : f32 to vector<24x16xf32>
    %99 = arith.cmpf ogt, %17, %98 : vector<24x16xf32>
    %100 = vector.broadcast %97 : vector<1x16xf32> to vector<24x16xf32>
    %101 = arith.subf %95, %100 : vector<24x16xf32>
    %102 = math.exp %101 : vector<24x16xf32>
    %cst_45 = arith.constant 0.000000e+00 : f32
    %103 = vector.broadcast %cst_45 : f32 to vector<24x16xf32>
    %104 = arith.select %99, %102, %103 : vector<24x16xi1>, vector<24x16xf32>
    %cst_46 = arith.constant dense<0.000000e+00> : vector<16xf32>
    %105 = vector.multi_reduction <add>, %104, %cst_46 [0] : vector<24x16xf32> to vector<16xf32>
    %106 = vector.shape_cast %105 : vector<16xf32> to vector<1x16xf32>
    %cst_47 = arith.constant 1.000000e-30 : f32
    %107 = vector.broadcast %cst_47 : f32 to vector<1x16xf32>
    %108 = arith.maximumf %106, %107 : vector<1x16xf32>
    %109 = vector.broadcast %108 : vector<1x16xf32> to vector<24x16xf32>
    %110 = arith.divf %104, %109 : vector<24x16xf32>
    %cst_48 = arith.constant dense<0.000000e+00> : vector<16x32xf32>
    %111 = tpu.matmul %110, %26, %cst_48 {dimension_numbers = #tpu.dot_dimension_numbers<[0], [0], [1], [1], [0, 1, 1, 1], [], []>} : vector<24x16xf32>, vector<24x32xf32>, vector<16x32xf32> -> vector<16x32xf32>
    %cst_49 = arith.constant dense<0.000000e+00> : vector<16x32xf32>
    %112 = tpu.matmul %111, %86, %cst_49 {dimension_numbers = #tpu.dot_dimension_numbers<[1], [0], [0], [1], [0, 0, 1, 1], [], []>} : vector<16x32xf32>, vector<32x32xf32>, vector<16x32xf32> -> vector<16x32xf32>
    %113 = math.tanh %112 : vector<16x32xf32>
    %114 = arith.addf %3, %55 : vector<16x32xf32>
    %115 = arith.addf %114, %84 : vector<16x32xf32>
    %116 = arith.addf %115, %113 : vector<16x32xf32>
    %c0_50 = arith.constant 0 : index
    %c0_51 = arith.constant 0 : index
    %117 = vector.load %arg8[%c0_50, %c0_51] : memref<16x32xf32, #tpu.memory_space<vmem>>, vector<16x32xf32>
    tpu.vector_store %arg8[%c0_50, %c0_51], %116 {strides = array<i32>} : memref<16x32xf32, #tpu.memory_space<vmem>>, vector<16x32xf32>,
    %c0_52 = arith.constant 0 : index
    %c0_53 = arith.constant 0 : index
    %118 = vector.load %arg9[%c0_52, %c0_53] : memref<8x32xf32, #tpu.memory_space<vmem>>, vector<8x32xf32>
    %c0_54 = arith.constant 0 : index
    %c0_55 = arith.constant 0 : index
    %c0_56 = arith.constant 0 : index
    %119 = vector.load %arg7[%c0_54, %c0_55, %c0_56] : memref<1x32x32xf32, #tpu.memory_space<vmem>>, vector<1x32x32xf32>
    %120 = vector.shape_cast %119 : vector<1x32x32xf32> to vector<32x32xf32>
    %cst_57 = arith.constant dense<0.000000e+00> : vector<8x32xf32>
    %121 = tpu.matmul %5, %120, %cst_57 {dimension_numbers = #tpu.dot_dimension_numbers<[1], [0], [0], [1], [0, 0, 1, 1], [], []>} : vector<8x32xf32>, vector<32x32xf32>, vector<8x32xf32> -> vector<8x32xf32>
    %122 = arith.addf %118, %121 : vector<8x32xf32>
    %c0_58 = arith.constant 0 : index
    %c0_59 = arith.constant 0 : index
    %123 = vector.load %arg9[%c0_58, %c0_59] : memref<8x32xf32, #tpu.memory_space<vmem>>, vector<8x32xf32>
    tpu.vector_store %arg9[%c0_58, %c0_59], %122 {strides = array<i32>} : memref<8x32xf32, #tpu.memory_space<vmem>>, vector<8x32xf32>,
    return
  }
  func.func @transform_0(%arg0: i32) -> (i32, i32) {
    %c0_i32 = arith.constant 0 : i32
    %c0_i32_0 = arith.constant 0 : i32
    %c0_i32_1 = arith.constant 0 : i32
    return %c0_i32, %c0_i32_0 : i32, i32
  }
  func.func @transform_1(%arg0: i32) -> (i32, i32) {
    %c0_i32 = arith.constant 0 : i32
    %c0_i32_0 = arith.constant 0 : i32
    %c0_i32_1 = arith.constant 0 : i32
    return %c0_i32, %c0_i32_0 : i32, i32
  }
  func.func @transform_2(%arg0: i32) -> (i32, i32) {
    %c0_i32 = arith.constant 0 : i32
    %c0_i32_0 = arith.constant 0 : i32
    %c0_i32_1 = arith.constant 0 : i32
    return %c0_i32, %c0_i32_0 : i32, i32
  }
  func.func @transform_3(%arg0: i32) -> (i32, i32) {
    %c0_i32 = arith.constant 0 : i32
    %c0_i32_0 = arith.constant 0 : i32
    %c0_i32_1 = arith.constant 0 : i32
    return %c0_i32, %c0_i32_0 : i32, i32
  }
  func.func @transform_4(%arg0: i32) -> (i32, i32, i32) {
    %c0_i32 = arith.constant 0 : i32
    %c0_i32_0 = arith.constant 0 : i32
    %c0_i32_1 = arith.constant 0 : i32
    return %arg0, %c0_i32, %c0_i32_0 : i32, i32, i32
  }
  func.func @transform_5(%arg0: i32) -> (i32, i32, i32) {
    %c0_i32 = arith.constant 0 : i32
    %c0_i32_0 = arith.constant 0 : i32
    %c0_i32_1 = arith.constant 0 : i32
    return %arg0, %c0_i32, %c0_i32_0 : i32, i32, i32
  }
  func.func @transform_6(%arg0: i32) -> (i32, i32, i32) {
    %c0_i32 = arith.constant 0 : i32
    %c0_i32_0 = arith.constant 0 : i32
    %c0_i32_1 = arith.constant 0 : i32
    return %arg0, %c0_i32, %c0_i32_0 : i32, i32, i32
  }
  func.func @transform_7(%arg0: i32) -> (i32, i32) {
    %c0_i32 = arith.constant 0 : i32
    %c0_i32_0 = arith.constant 0 : i32
    %c0_i32_1 = arith.constant 0 : i32
    return %c0_i32, %c0_i32_0 : i32, i32
  }
  func.func @transform_8(%arg0: i32) -> (i32, i32) {
    %c0_i32 = arith.constant 0 : i32
    %c0_i32_0 = arith.constant 0 : i32
    %c0_i32_1 = arith.constant 0 : i32
    return %c0_i32, %c0_i32_0 : i32, i32
  }
}

module attributes {stable_mosaic.version = 11 : i64} {
  func.func @conve_kernel(%arg0: i32, %arg1: memref<2x1xi32, #tpu.memory_space<vmem>>, %arg2: memref<2x1xi32, #tpu.memory_space<vmem>>, %arg3: memref<16x32xf32, #tpu.memory_space<vmem>>, %arg4: memref<8x32xf32, #tpu.memory_space<vmem>>, %arg5: memref<64x224xf32, #tpu.memory_space<vmem>>, %arg6: memref<224x32xf32, #tpu.memory_space<vmem>>, %arg7: memref<2x16xf32, #tpu.memory_space<vmem>>) attributes {dimension_semantics = [#tpu.dimension_semantics<arbitrary>], iteration_bounds = array<i64: 1>, scalar_prefetch = 0 : i64, scratch_operands = 0 : i64, tpu.core_type = #tpu.core_type<tc>, window_params = [{pipeline_mode = #tpu.pipeline_mode<synchronous>, transform_indices = @transform_0, window_bounds = array<i64: 2, 1>}, {pipeline_mode = #tpu.pipeline_mode<synchronous>, transform_indices = @transform_1, window_bounds = array<i64: 2, 1>}, {pipeline_mode = #tpu.pipeline_mode<synchronous>, transform_indices = @transform_2, window_bounds = array<i64: 16, 32>}, {pipeline_mode = #tpu.pipeline_mode<synchronous>, transform_indices = @transform_3, window_bounds = array<i64: 8, 32>}, {pipeline_mode = #tpu.pipeline_mode<synchronous>, transform_indices = @transform_4, window_bounds = array<i64: 64, 224>}, {pipeline_mode = #tpu.pipeline_mode<synchronous>, transform_indices = @transform_5, window_bounds = array<i64: 224, 32>}, {pipeline_mode = #tpu.pipeline_mode<synchronous>, transform_indices = @transform_6, window_bounds = array<i64: 2, 16>}]} {
    %c0 = arith.constant 0 : index
    %c0_0 = arith.constant 0 : index
    %0 = vector.load %arg3[%c0, %c0_0] : memref<16x32xf32, #tpu.memory_space<vmem>>, vector<16x32xf32>
    %c0_1 = arith.constant 0 : index
    %c0_2 = arith.constant 0 : index
    %1 = vector.load %arg4[%c0_1, %c0_2] : memref<8x32xf32, #tpu.memory_space<vmem>>, vector<8x32xf32>
    %2 = tpu.iota {dimensions = array<i32: 1>} : vector<2x16xi32>
    %3 = tpu.iota {dimensions = array<i32: 1>} : vector<2x8xi32>
    %c0_3 = arith.constant 0 : index
    %c0_4 = arith.constant 0 : index
    %4 = vector.load %arg1[%c0_3, %c0_4] : memref<2x1xi32, #tpu.memory_space<vmem>>, vector<2x1xi32>
    %5 = vector.broadcast %4 : vector<2x1xi32> to vector<2x16xi32>
    %6 = arith.cmpi eq, %5, %2 : vector<2x16xi32>
    %7 = arith.extui %6 : vector<2x16xi1> to vector<2x16xi32>
    %8 = arith.sitofp %7 : vector<2x16xi32> to vector<2x16xf32>
    %c0_5 = arith.constant 0 : index
    %c0_6 = arith.constant 0 : index
    %9 = vector.load %arg2[%c0_5, %c0_6] : memref<2x1xi32, #tpu.memory_space<vmem>>, vector<2x1xi32>
    %10 = vector.broadcast %9 : vector<2x1xi32> to vector<2x8xi32>
    %11 = arith.cmpi eq, %10, %3 : vector<2x8xi32>
    %12 = arith.extui %11 : vector<2x8xi1> to vector<2x8xi32>
    %13 = arith.sitofp %12 : vector<2x8xi32> to vector<2x8xf32>
    %cst = arith.constant dense<0.000000e+00> : vector<2x32xf32>
    %14 = tpu.matmul %8, %0, %cst {dimension_numbers = #tpu.dot_dimension_numbers<[1], [0], [0], [1], [0, 0, 1, 1], [], []>} : vector<2x16xf32>, vector<16x32xf32>, vector<2x32xf32> -> vector<2x32xf32>
    %cst_7 = arith.constant dense<0.000000e+00> : vector<2x32xf32>
    %15 = tpu.matmul %13, %1, %cst_7 {dimension_numbers = #tpu.dot_dimension_numbers<[1], [0], [0], [1], [0, 0, 1, 1], [], []>} : vector<2x8xf32>, vector<8x32xf32>, vector<2x32xf32> -> vector<2x32xf32>
    %c0_8 = arith.constant 0 : index
    %c0_9 = arith.constant 0 : index
    %16 = vector.load %arg5[%c0_8, %c0_9] : memref<64x224xf32, #tpu.memory_space<vmem>>, vector<32x224xf32>
    %cst_10 = arith.constant dense<0.000000e+00> : vector<2x224xf32>
    %17 = tpu.matmul %14, %16, %cst_10 {dimension_numbers = #tpu.dot_dimension_numbers<[1], [0], [0], [1], [0, 0, 1, 1], [], []>} : vector<2x32xf32>, vector<32x224xf32>, vector<2x224xf32> -> vector<2x224xf32>
    %c32 = arith.constant 32 : index
    %c0_11 = arith.constant 0 : index
    %18 = vector.load %arg5[%c32, %c0_11] : memref<64x224xf32, #tpu.memory_space<vmem>>, vector<32x224xf32>
    %cst_12 = arith.constant dense<0.000000e+00> : vector<2x224xf32>
    %19 = tpu.matmul %15, %18, %cst_12 {dimension_numbers = #tpu.dot_dimension_numbers<[1], [0], [0], [1], [0, 0, 1, 1], [], []>} : vector<2x32xf32>, vector<32x224xf32>, vector<2x224xf32> -> vector<2x224xf32>
    %20 = arith.addf %17, %19 : vector<2x224xf32>
    %cst_13 = arith.constant 0.000000e+00 : f32
    %21 = vector.broadcast %cst_13 : f32 to vector<2x224xf32>
    %22 = arith.maximumf %20, %21 : vector<2x224xf32>
    %c0_14 = arith.constant 0 : index
    %c0_15 = arith.constant 0 : index
    %23 = vector.load %arg6[%c0_14, %c0_15] : memref<224x32xf32, #tpu.memory_space<vmem>>, vector<224x32xf32>
    %cst_16 = arith.constant dense<0.000000e+00> : vector<2x32xf32>
    %24 = tpu.matmul %22, %23, %cst_16 {dimension_numbers = #tpu.dot_dimension_numbers<[1], [0], [0], [1], [0, 0, 1, 1], [], []>} : vector<2x224xf32>, vector<224x32xf32>, vector<2x32xf32> -> vector<2x32xf32>
    %cst_17 = arith.constant 0.000000e+00 : f32
    %25 = vector.broadcast %cst_17 : f32 to vector<2x32xf32>
    %26 = arith.maximumf %24, %25 : vector<2x32xf32>
    %cst_18 = arith.constant dense<0.000000e+00> : vector<2x16xf32>
    %27 = tpu.matmul %26, %0, %cst_18 {dimension_numbers = #tpu.dot_dimension_numbers<[1], [1], [0], [0], [0, 0, 1, 0], [], []>} : vector<2x32xf32>, vector<16x32xf32>, vector<2x16xf32> -> vector<2x16xf32>
    %28 = arith.negf %27 : vector<2x16xf32>
    %29 = math.exp %28 : vector<2x16xf32>
    %cst_19 = arith.constant 1.000000e+00 : f32
    %30 = vector.broadcast %cst_19 : f32 to vector<2x16xf32>
    %31 = arith.addf %30, %29 : vector<2x16xf32>
    %32 = arith.divf %30, %31 : vector<2x16xf32>
    %c0_20 = arith.constant 0 : index
    %c0_21 = arith.constant 0 : index
    %33 = vector.load %arg7[%c0_20, %c0_21] : memref<2x16xf32, #tpu.memory_space<vmem>>, vector<2x16xf32>
    tpu.vector_store %arg7[%c0_20, %c0_21], %32 {strides = array<i32>} : memref<2x16xf32, #tpu.memory_space<vmem>>, vector<2x16xf32>,
    return
  }
  func.func @transform_0(%arg0: i32) -> (i32, i32) {
    %c0_i32 = arith.constant 0 : i32
    %c0_i32_0 = arith.constant 0 : i32
    %c0_i32_1 = arith.constant 0 : i32
    return %c0_i32, %c0_i32_0 : i32, i32
  }
  func.func @transform_1(%arg0: i32) -> (i32, i32) {
    %c0_i32 = arith.constant 0 : i32
    %c0_i32_0 = arith.constant 0 : i32
    %c0_i32_1 = arith.constant 0 : i32
    return %c0_i32, %c0_i32_0 : i32, i32
  }
  func.func @transform_2(%arg0: i32) -> (i32, i32) {
    %c0_i32 = arith.constant 0 : i32
    %c0_i32_0 = arith.constant 0 : i32
    %c0_i32_1 = arith.constant 0 : i32
    return %c0_i32, %c0_i32_0 : i32, i32
  }
  func.func @transform_3(%arg0: i32) -> (i32, i32) {
    %c0_i32 = arith.constant 0 : i32
    %c0_i32_0 = arith.constant 0 : i32
    %c0_i32_1 = arith.constant 0 : i32
    return %c0_i32, %c0_i32_0 : i32, i32
  }
  func.func @transform_4(%arg0: i32) -> (i32, i32) {
    %c0_i32 = arith.constant 0 : i32
    %c0_i32_0 = arith.constant 0 : i32
    %c0_i32_1 = arith.constant 0 : i32
    return %c0_i32, %c0_i32_0 : i32, i32
  }
  func.func @transform_5(%arg0: i32) -> (i32, i32) {
    %c0_i32 = arith.constant 0 : i32
    %c0_i32_0 = arith.constant 0 : i32
    %c0_i32_1 = arith.constant 0 : i32
    return %c0_i32, %c0_i32_0 : i32, i32
  }
  func.func @transform_6(%arg0: i32) -> (i32, i32) {
    %c0_i32 = arith.constant 0 : i32
    %c0_i32_0 = arith.constant 0 : i32
    %c0_i32_1 = arith.constant 0 : i32
    return %c0_i32, %c0_i32_0 : i32, i32
  }
}

</mosaic_0001>

<bundles_post_ra>
// kernel: segnn_forward.3
= control target key start
LH: loop header
LB: loop body
LE: loop exit
PB: predicated region body
PF: predicated region fallthrough
CT: control target
= control target key end

     0   :  { %v631_v1 = vmov 0   ;;  %v632_v2 = vmov 0.0   ;;  %s876_s0 = inlined_call_operand.vmem [shape: s32[2,1], index: 0, kind: input, shape index: {}]   ;;  %s877_s1 = inlined_call_operand.vmem [shape: s32[2,1], index: 1, kind: input, shape index: {}]   ;;  %s878_s2 = inlined_call_operand.vmem [shape: f32[16,32], index: 2, kind: input, shape index: {}]   ;;  %s879_s3 = inlined_call_operand.vmem [shape: f32[8,32], index: 3, kind: input, shape index: {}]   ;;  %s880_s4 = inlined_call_operand.vmem [shape: f32[64,224], index: 4, kind: input, shape index: {}]   ;;  %s881_s5 = inlined_call_operand.vmem [shape: f32[224,32], index: 5, kind: input, shape index: {}]   ;;  %s882_s6 = inlined_call_operand.hbm [shape: f32[2,16], index: 6, kind: output, shape index: {}]  }
   0x1   :  { %v29_v0 = vld [vmem:[%s876_s0] sm:$0x3]  ;;  %604 = vset.pattern.permute.xlu0 %v631_v1  ;;  %581 = vmatprep.subr.mxu0 %v632_v2  ;;  %v677_v3 = vld [vmem:[%s878_s2 + $0x8] sm:$0xff] }
   0x2   :  { %v682_v4 = vld [vmem:[%s878_s2] sm:$0xff]  ;;  %31 = vperm.xlu0 %604, %v29_v0   ;;  %582 = vmatpush3.msra.mxu0 %v677_v3 }
   0x3   :  { %11 = vsyncpa [#allocation3], 0  ;;  %v36_v5 = vld [vmem:[%s877_s1] sm:$0x3]  ;;  %583 = vmatprep.subr.mxu0 %v632_v2  ;;  %vm633_vm0 = vmmov 0   ;;  %390 = vmatprep.subr.mxu1 %v632_v2  ;;  %v27_v6 = vlaneseq  ;;  %vm43_vm1 = vcmask 130048  }
   0x4   :  { %585 = vmatprep.mubr.msk.f32.mxu0 %vm633_vm0, %v632_v2  ;;  %584 = vmatpush3.msra.mxu0 %v682_v4  ;;  %v26_v9 = vld [vmem:[%s879_s3] sm:$0xff]  ;;  %v206_v11 = vld [vmem:[%s880_s4 + $0x78] sm:$0xff]  ;;  %vm117_vm3 = vcmask 64512   ;;  %v205_v13 = vld [vmem:[%s880_s4 + $0x70] sm:$0xff]  ;;  %vm207_vm5 = vcmask 261120   ;;  %vm386_vm6 = vcmask 785408  }
   0x5   :  { %588 = vmatprep.subr.mxu0 %v632_v2  ;;  %v28_v7 = vand.u32 127, %v27_v6  ;;  %v204_v15 = vld [vmem:[%s880_s4 + $0x68] sm:$0xff]  ;;  %v203_v16 = vld [vmem:[%s880_s4 + $0x60] sm:$0xff]  ;;  %v202_v17 = vld [vmem:[%s880_s4 + $0x58] sm:$0xff]  ;;  %vm546_vm7 = vcmask 123904  }
   0x6   :  { %38 = vperm.xlu0 %604, %v36_v5   ;;  %v201_v18 = vld [vmem:[%s880_s4 + $0x50] sm:$0xff]  ;;  %v200_v19 = vld [vmem:[%s880_s4 + $0x48] sm:$0xff]  ;;  %v199_v20 = vld [vmem:[%s880_s4 + $0x40] sm:$0xff] }
   0x7   :  { %v198_v21 = vld [vmem:[%s880_s4 + $0x38] sm:$0xff]  ;;  %v372_v23 = vld [vmem:[%s881_s5 + $0x70] sm:$0xff]  ;;  %v371_v24 = vld [vmem:[%s881_s5 + $0x68] sm:$0xff] }
   0x8   :  { %v373_v22 = vld [vmem:[%s881_s5 + $0x78] sm:$0xff]  ;;  %v370_v25 = vld [vmem:[%s881_s5 + $0x60] sm:$0xff]  ;;  %v368_v27 = vld [vmem:[%s881_s5 + $0x50] sm:$0xff] }
   0x9   :  { %391 = vmatpush1.msra.mxu1 %v373_v22  ;;  %v369_v26 = vld [vmem:[%s881_s5 + $0x58] sm:$0xff]  ;;  %v367_v28 = vld [vmem:[%s881_s5 + $0x48] sm:$0xff]  ;;  %v366_v29 = vld [vmem:[%s881_s5 + $0x40] sm:$0xff] }
   0xa   :  { %392 = vmatprep.subr.mxu1 %v632_v2  ;;  %v365_v30 = vld [vmem:[%s881_s5 + $0x38] sm:$0xff]  ;;  %v364_v31 = vld [vmem:[%s881_s5 + $0x30] sm:$0xff]  ;;  %v363_v32 = vld [vmem:[%s881_s5 + $0x28] sm:$0xff] }
   0xb   :  { %393 = vmatpush1.msra.mxu1 %v372_v23  ;;  %v362_v33 = vld [vmem:[%s881_s5 + $0x20] sm:$0xff]  ;;  %v361_v34 = vld [vmem:[%s881_s5 + $0x18] sm:$0xff]  ;;  %v360_v35 = vld [vmem:[%s881_s5 + $0x10] sm:$0xff] }
   0xc   :  { %394 = vmatprep.subr.mxu1 %v632_v2  ;;  %v359_v36 = vld [vmem:[%s881_s5 + $0x8] sm:$0xff]  ;;  %v358_v37 = vld [vmem:[%s881_s5] sm:$0xff]  ;;  %v385_v38 = vld [vmem:[%s881_s5 + $0xd8] sm:$0xff] }
   0xd   :  { %395 = vmatpush1.msra.mxu1 %v371_v24  ;;  %v384_v39 = vld [vmem:[%s881_s5 + $0xd0] sm:$0xff]  ;;  %v383_v40 = vld [vmem:[%s881_s5 + $0xc8] sm:$0xff]  ;;  %v382_v41 = vld [vmem:[%s881_s5 + $0xc0] sm:$0xff] }
   0xe   :  { %396 = vmatprep.subr.mxu1 %v632_v2  ;;  %v197_v44 = vld [vmem:[%s880_s4 + $0x30] sm:$0xff]  ;;  %v196_v46 = vld [vmem:[%s880_s4 + $0x28] sm:$0xff]  ;;  %v195_v47 = vld [vmem:[%s880_s4 + $0x20] sm:$0xff] }
   0xf   :  { %397 = vmatpush1.msra.mxu1 %v370_v25  ;;  %v194_v49 = vld [vmem:[%s880_s4 + $0x18] sm:$0xff]  ;;  %v193_v50 = vld [vmem:[%s880_s4 + $0x10] sm:$0xff]  ;;  %v192_v51 = vld [vmem:[%s880_s4 + $0x8] sm:$0xff] }
  0x10   :  { %398 = vmatprep.subr.mxu1 %v632_v2  ;;  %v191_v52 = vld [vmem:[%s880_s4] sm:$0xff]  ;;  %v381_v53 = vld [vmem:[%s881_s5 + $0xb8] sm:$0xff]  ;;  %v380_v54 = vld [vmem:[%s881_s5 + $0xb0] sm:$0xff] }
  0x11   :  { %399 = vmatpush1.msra.mxu1 %v369_v26  ;;  %v379_v55 = vld [vmem:[%s881_s5 + $0xa8] sm:$0xff]  ;;  %v378_v56 = vld [vmem:[%s881_s5 + $0xa0] sm:$0xff]  ;;  %v377_v57 = vld [vmem:[%s881_s5 + $0x98] sm:$0xff] }
  0x12   :  { %400 = vmatprep.subr.mxu1 %v632_v2  ;;  %v376_v58 = vld [vmem:[%s881_s5 + $0x90] sm:$0xff]  ;;  %v375_v59 = vld [vmem:[%s881_s5 + $0x88] sm:$0xff]  ;;  %v374_v60 = vld [vmem:[%s881_s5 + $0x80] sm:$0xff]  ;;  %s634_s5 = smov [#allocation2]  }
  0x13   :  { %401 = vmatpush1.msra.mxu1 %v368_v27  ;;  %s554_s7 = sshll.u32 %s634_s5, 4  ;;  %s555_s7 = int_to_ptr.vmem [resolvable:$true] %s554_s7 }
  0x14   :  { %402 = vmatprep.subr.mxu1 %v632_v2  ;;  %s609_s3 = scalar_lea.vmem %s555_s7, 32  ;;  %p614_p1 = scmp.lt.s32.totalorder %s555_s7, %s555_s7 }
  0x15   :  { %403 = vmatpush1.msra.mxu1 %v367_v28  ;;  %p610_p0 = scmp.ne.s32.totalorder %s555_s7, %s609_s3  ;;  %p615_p2 = scmp.lt.s32.totalorder %s609_s3, %s609_s3 }
  0x16   :  { %404 = vmatprep.subr.mxu1 %v632_v2 }
  0x17   :  { %405 = vmatpush1.msra.mxu1 %v366_v29  ;;  %p616_p3 = por %p615_p2, %p614_p1 }
  0x18   :  { %406 = vmatprep.subr.mxu1 %v632_v2 }
  0x19   :  { %407 = vmatpush1.msra.mxu1 %v365_v30  ;;  %p617_p4 = pnand %p616_p3, %p610_p0 }
  0x1a   :  { %408 = vmatprep.subr.mxu1 %v632_v2 }
  0x1b   :  { %409 = vmatpush1.msra.mxu1 %v364_v31 }
  0x1c   :  { %410 = vmatprep.subr.mxu1 %v632_v2 }
  0x1d   :  { %411 = vmatpush1.msra.mxu1 %v363_v32 }
  0x1e   :  { %412 = vmatprep.subr.mxu1 %v632_v2 }
  0x1f   :  { %413 = vmatpush1.msra.mxu1 %v362_v33 }
  0x20   :  { %414 = vmatprep.subr.mxu1 %v632_v2 }
  0x21   :  { %415 = vmatpush1.msra.mxu1 %v361_v34 }
  0x22   :  { %416 = vmatprep.subr.mxu1 %v632_v2 }
  0x23   :  { %417 = vmatpush1.msra.mxu1 %v360_v35 }
  0x24   :  { %418 = vmatprep.subr.mxu1 %v632_v2 }
  0x25   :  { %419 = vmatpush1.msra.mxu1 %v359_v36 }
  0x26   :  { %420 = vmatprep.subr.mxu1 %v632_v2 }
  0x27   :  { %421 = vmatpush1.msra.mxu1 %v358_v37 }
  0x28   :  { %430 = vmatprep.subr.mxu1 %v632_v2 }
  0x29   :  { %431 = vmatpush2.msra.mxu1 %v385_v38 }
  0x2a   :  { %432 = vmatprep.subr.mxu1 %v632_v2 }
  0x2b   :  { %433 = vmatpush2.msra.mxu1 %v384_v39 }
  0x2c   :  { %434 = vmatprep.subr.mxu1 %v632_v2 }
  0x2d   :  { %435 = vmatpush2.msra.mxu1 %v383_v40 }
  0x2e   :  { %436 = vmatprep.subr.mxu1 %v632_v2 }
  0x2f   :  { %437 = vmatpush2.msra.mxu1 %v382_v41 }
  0x30   :  { %438 = vmatprep.subr.mxu1 %v632_v2 }
  0x31   :  { %439 = vmatpush2.msra.mxu1 %v381_v53 }
  0x32   :  { %440 = vmatprep.subr.mxu1 %v632_v2 }
  0x33   :  { %441 = vmatpush2.msra.mxu1 %v380_v54 }
  0x34   :  { %442 = vmatprep.subr.mxu1 %v632_v2 }
  0x35   :  { %443 = vmatpush2.msra.mxu1 %v379_v55 }
  0x36   :  { %444 = vmatprep.subr.mxu1 %v632_v2 }
  0x37   :  { %445 = vmatpush2.msra.mxu1 %v378_v56 }
  0x38   :  { %446 = vmatprep.subr.mxu1 %v632_v2 }
  0x39   :  { %447 = vmatpush2.msra.mxu1 %v377_v57 }
  0x3a   :  { %448 = vmatprep.subr.mxu1 %v632_v2 }
  0x3b   :  { %449 = vmatpush2.msra.mxu1 %v376_v58 }
  0x3c   :  { %450 = vmatprep.subr.mxu1 %v632_v2 }
  0x3d   :  { %451 = vmatpush2.msra.mxu1 %v375_v59 }
  0x3e   :  { %452 = vmatprep.subr.mxu1 %v632_v2 }
  0x3f   :  { %453 = vmatpush2.msra.mxu1 %v374_v60 }
  0x7d   :  { %v32_v8 = vpop.permute.xlu0 %31 }
  0x7e   :  { %vm33_vm2 = vcmp.eq.s32.totalorder %v32_v8, %v28_v7 }
  0x7f   :  { %v562_v10 = vsel %vm33_vm2, 1.0, %v632_v2 }
  0x80   :  { %586 = vmatmul.mubr.msk.f32.vlgmr.msra.gmra.mxu0 %vm43_vm1, %v562_v10 }
  0x81   :  { %589 = vmatpush3.msra.mxu0 %v26_v9  ;;  %v39_v12 = vpop.permute.xlu0 %38  ;;  %590 = vmatprep.mubr.msk.f32.mxu0 %vm633_vm0, %v632_v2 }
  0x82   :  { %vm40_vm4 = vcmp.eq.s32.totalorder %v39_v12, %v28_v7  ;;  %235 = vmatprep.subr.mxu0 %v206_v11 }
  0x83   :  { %v563_v14 = vsel %vm40_vm4, 1.0, %v632_v2 }
  0x84   :  { %591 = vmatmul.mubr.msk.f32.vlgmr.msra.gmra.mxu0 %vm117_vm3, %v563_v14 }
  0x85   :  { %236 = vmatpush1.msra.mxu0 %v205_v13  ;;  %275 = vmatprep.mubr.f32.mxu0 %v632_v2 }
  0x86   :  { %237 = vmatprep.subr.mxu0 %v204_v15 }
  0x87   :  { %238 = vmatpush1.msra.mxu0 %v203_v16 }
  0x88   :  { %239 = vmatprep.subr.mxu0 %v202_v17 }
  0x89   :  { %240 = vmatpush1.msra.mxu0 %v201_v18 }
  0x8a   :  { %241 = vmatprep.subr.mxu0 %v200_v19 }
  0x8b   :  { %242 = vmatpush1.msra.mxu0 %v199_v20 }
  0x8c   :  { %309 = vmatprep.subr.mxu0 %v198_v21 }
 0x140   :  { %v113_v42 = vpop.f32.mrf.mxu0 }
 0x142   :  { %v587_v43 = vpop.f32.mrf.mxu0 }
 0x144   :  { %v187_v45 = vpop.f32.mrf.mxu0 }
 0x145   :  { %566 = vmatmul.mubr.msk.f32.vlgmr.msra.gmra.mxu0 %vm207_vm5, %v187_v45 }
 0x146   :  { %310 = vmatpush1.msra.mxu0 %v197_v44  ;;  %v592_v48 = vpop.f32.mrf.mxu0  ;;  %349 = vmatprep.mubr.f32.mxu0 %v632_v2 }
 0x147   :  { %311 = vmatprep.subr.mxu0 %v196_v46 }
 0x148   :  { %312 = vmatpush1.msra.mxu0 %v195_v47 }
 0x149   :  { %313 = vmatprep.subr.mxu0 %v194_v49 }
 0x14a   :  { %314 = vmatpush1.msra.mxu0 %v193_v50 }
 0x14b   :  { %315 = vmatprep.subr.mxu0 %v192_v51 }
 0x14c   :  { %316 = vmatpush1.msra.mxu0 %v191_v52 }
 0x14d   :  { %567 = vmatmul.mubr.msk.f32.vlgmr.msra.gmra.mxu0 %vm207_vm5, %v113_v42  ;;  %593 = vmatprep.subr.mxu0 %v632_v2 }
 0x14e   :  { %594 = vmatpush3.xpose.msk.msra.mxu0 %vm207_vm5, %v677_v3  ;;  %597 = vmatprep.mubr.msk.f32.mxu0 %vm633_vm0, %v632_v2 }
 0x14f   :  { %595 = vmatprep.subr.mxu0 %v632_v2 }
 0x152   :  { %596 = vmatpush3.xpose.msk.msra.mxu0 %vm207_vm5, %v682_v4 }
 0x205   :  { %v277_v61 = vpop.f32.mrf.mxu0 }
 0x207   :  { %v279_v62 = vpop.f32.mrf.mxu0 }
 0x20d   :  { %v351_v63 = vpop.f32.mrf.mxu0 }
 0x20e   :  { %v352_v0 = vadd.f32 %v351_v63, %v277_v61 }
 0x20f   :  { %v353_v1 = vpop.f32.mrf.mxu0 }
 0x210   :  { %v354_v3 = vadd.f32 %v353_v1, %v279_v62  ;;  %v356_v5 = vmax.f32 %v352_v0, 0.0 }
 0x212   :  { %v357_v4 = vmax.f32 %v354_v3, 0.0 }
 0x214   :  { %568 = vmatprep.mubr.msk.f32.mxu1 %vm386_vm6, %v357_v4 }
 0x215   :  { %455 = vmatmul.mubr.f32.vlgmr.msra.gmra.mxu1 %v356_v5 }
 0x2d5   :  { %v456_v6 = vpop.f32.mrf.mxu1 }
 0x2d6   :  { %v460_v7 = vmax.f32 %v456_v6, 0.0 }
 0x2d7   :  { %v458_v8 = vpop.f32.mrf.mxu1 }
 0x2d8   :  { %598 = vmatmul.mubr.msk.f32.vlgmr.msra.gmra.mxu0 %vm207_vm5, %v460_v7 }
 0x398   :  { %v536_v9 = vpop.f32.mrf.mxu0 }
 0x399   :  { %v572_v10 = vmul.f32 -1.442695, %v536_v9 }
 0x39a   :  { %v599_v2 = vpop.f32.mrf.mxu0 }
 0x39b   :  { %605 = vpow2.f32 %v572_v10 }
 0x3a8   :  { %v606_v11 = vpop.eup %605 }
 0x3a9   :  { %v543_v12 = vadd.f32 1.0, %v606_v11 }
 0x3ab   :  { %607 = vrcp.f32 %v543_v12 }
 0x3b8   :  { %v608_v13 = vpop.eup %607 }
 0x3b9   :  { %547 = vst.msk [vmem:[#allocation2] sm:$0x3] %vm546_vm7, %v608_v13 }
 0x3ba   :  { %620 = shalt.err (!%p617_p4)
}
 0x3bb   :  { %557 = dma.vmem_to_hbm [thread:$0]  %s555_s7, 32, %s882_s6, [#allocation3]  }
 0x3bc   :  { %629 = dma.done.wait [#allocation3], 32  }
 0x3bd   :  { %630 = vsyncadd [#allocation3], 4294967264 }
 0x3be   :  { %561 = vsyncpa [#allocation3], 1 }

// kernel: segnn_forward.2
= control target key start
LH: loop header
LB: loop body
LE: loop exit
PB: predicated region body
PF: predicated region fallthrough
CT: control target
= control target key end

     0   :  { %s1900_s27 = smov 0   ;;  %s2167_s0 = inlined_call_operand.vmem [shape: s32[24,1], index: 0, kind: input, shape index: {}]   ;;  %s2168_s1 = inlined_call_operand.vmem [shape: s32[24,1], index: 1, kind: input, shape index: {}]   ;;  %s2169_s2 = inlined_call_operand.vmem [shape: s32[24,1], index: 2, kind: input, shape index: {}]   ;;  %s2170_s3 = inlined_call_operand.vmem [shape: f32[16,32], index: 3, kind: input, shape index: {}]   ;;  %s2171_s4 = inlined_call_operand.vmem [shape: f32[2,8,32], index: 4, kind: input, shape index: {}]   ;;  %s2172_s5 = inlined_call_operand.vmem [shape: f32[2,96,32], index: 5, kind: input, shape index: {}]   ;;  %s2173_s6 = inlined_call_operand.vmem [shape: f32[2,32,32], index: 6, kind: input, shape index: {}]   ;;  %s2174_s7 = inlined_call_operand.vmem [shape: f32[16,32], index: 7, kind: output, shape index: {0}]   ;;  %s2175_s8 = inlined_call_operand.vmem [shape: f32[8,32], index: 8, kind: output, shape index: {1}]  }
   0x1 LB: > { %s1589_s28 = sadd.s32 4294967295, %s1849_s27   ;;  %p1592_p0 = scmp.ge.s32.totalorder %s1849_s27, 1  ;;  %s1849_s27 = sphi %s1900_s27, %s19_s27  }
   0x2   : > { %p274_p1 = scmp.lt.s32.totalorder %s1849_s27, 3 }
   0x4   : > { %p275_p2 = pnand %p1592_p0, %p274_p1 }
   0x5   : > { %p312_p3 = scmp.lt.s32.totalorder (!%p275_p2), %s1589_s28, 1  ;;  %p1597_p4 = scmp.ne.s32.totalorder (!%p275_p2), %s1589_s28, 0 }
   0x6   : > { %278 = sbr.rel (%p275_p2) target bundleno = 1132 (0x46c), region = 48 }
   0xb   : > { %s313_s29 = scalar_select %p312_p3, %s1589_s28, 1 }
   0xc   : > { %329 = sbr.rel (%p1597_p4) target bundleno = 20 (0x14), region = 52 }
   0xd   : > { %s1593_s30 = sshll.u32 %s313_s29, 3  ;;  %s1792_s9 = smul.u32 96, %s313_s29 }
   0xe   : > { %s1911_s12 = scalar_lea.vmem %s2171_s4, %s1593_s30  ;;  %s1631_s13 = sshll.u32 %s313_s29, 5 }
   0xf   : > { %s1916_s16 = scalar_lea.vmem %s2172_s5, %s1792_s9  ;;  %s1921_s19 = scalar_lea.vmem %s2173_s6, %s1631_s13 }
  0x11   : > { %v330_v0 = vld [vmem:[%s2170_s3] sm:$0xff]  ;;  %vm332_vm0 = vcmask 261120   ;;  %v331_v1 = vld [vmem:[%s2170_s3 + $0x8] sm:$0xff]  ;;  %v1851_v2 = vmov 0.0  }
  0x12   : > { %333 = vst.msk [vmem:[%s2174_s7] sm:$0xff] %vm332_vm0, %v330_v0  ;;  %334 = vst.msk [vmem:[%s2174_s7 + $0x8] sm:$0xff] %vm332_vm0, %v331_v1 }
  0x13   : > { %335 = vst.msk [vmem:[%s2175_s8] sm:$0xff] %vm332_vm0, %v1851_v2 }
  0x14 PF: > { %v343_v3 = vld [vmem:[%s2167_s0 + $0x10] sm:$0xff]  ;;  %v341_v4 = vld [vmem:[%s2167_s0] sm:$0xff]  ;;  %v1852_v5 = vmov 0   ;;  %v342_v7 = vld [vmem:[%s2167_s0 + $0x8] sm:$0xff]  ;;  %v1853_v8 = vmov 0.0   ;;  %vm1854_vm1 = vmmov 0   ;;  %v339_v16 = vlaneseq }
  0x15   : > { %1806 = vset.pattern.permute.xlu1 %v1852_v5  ;;  %1805 = vset.pattern.permute.xlu0 %v1852_v5  ;;  %v362_v6 = vld [vmem:[%s2168_s1] sm:$0xff]  ;;  %v363_v11 = vld [vmem:[%s2168_s1 + $0x8] sm:$0xff]  ;;  %v364_v13 = vld [vmem:[%s2168_s1 + $0x10] sm:$0xff]  ;;  %vm404_vm2 = vcmask 130048   ;;  %vm583_vm9 = vcmask 64512   ;;  %vm683_vm13 = vcmask 261120  }
  0x16   : > { %351 = vperm.xlu1 %1806, %v343_v3   ;;  %345 = vperm.xlu0 %1805, %v341_v4   ;;  %v383_v12 = vld [vmem:[%s2169_s2] sm:$0xff]  ;;  %v384_v14 = vld [vmem:[%s2169_s2 + $0x8] sm:$0xff]  ;;  %v385_v15 = vld [vmem:[%s2169_s2 + $0x10] sm:$0xff]  ;;  %v340_v17 = vand.u32 127, %v339_v16 }
  0x17   : > { %1684 = vmatprep.subr.mxu0 %v1853_v8  ;;  %1688 = vmatprep.mubr.msk.f32.mxu0 %vm1854_vm1, %v1853_v8  ;;  %v1989_v20 = vld [vmem:[%s1911_s12] sm:$0xff] }
  0x18   : > { %1697 = vmatprep.subr.mxu1 %v1853_v8  ;;  %1701 = vmatprep.mubr.msk.f32.mxu1 %vm1854_vm1, %v1853_v8 }
  0x19   : > { %v1954_v9 = vld [vmem:[%s2174_s7 + $0x8] sm:$0xff]  ;;  %v1962_v10 = vld [vmem:[%s2174_s7] sm:$0xff] }
  0x1a   : > { %1685 = vmatpush3.msra.mxu0 %v1954_v9  ;;  %1698 = vmatpush3.msra.mxu1 %v1954_v9 }
  0x1b   : > { %1686 = vmatprep.subr.mxu0 %v1853_v8  ;;  %366 = vperm.xlu1 %1806, %v362_v6  }
  0x1c   : > { %348 = vperm.xlu0 %1805, %v342_v7   ;;  %1687 = vmatpush3.msra.mxu0 %v1962_v10 }
  0x1d   : > { %1699 = vmatprep.subr.mxu1 %v1853_v8  ;;  %1710 = vmatprep.subr.mxu0 %v1853_v8 }
  0x1e   : > { %1700 = vmatpush3.msra.mxu1 %v1962_v10 }
  0x1f   : > { %369 = vperm.xlu1 %1806, %v363_v11  }
  0x20   : > { %387 = vperm.xlu0 %1805, %v383_v12  }
  0x23   : > { %372 = vperm.xlu1 %1806, %v364_v13  }
  0x24   : > { %390 = vperm.xlu0 %1805, %v384_v14  }
  0x28   : > { %393 = vperm.xlu0 %1805, %v385_v15  }
  0x91   : > { %v352_v18 = vpop.permute.xlu1 %351  ;;  %v346_v19 = vpop.permute.xlu0 %345 }
  0x92   : > { %vm353_vm3 = vcmp.eq.s32.totalorder %v346_v19, %v340_v17  ;;  %vm355_vm4 = vcmp.eq.s32.totalorder %v352_v18, %v340_v17 }
  0x93   : > { %v1598_v21 = vsel %vm353_vm3, 1.0, %v1853_v8  ;;  %v1600_v26 = vsel %vm355_vm4, 1.0, %v1853_v8 }
  0x94   : > { %1689 = vmatmul.mubr.msk.f32.vlgmr.msra.gmra.mxu0 %vm404_vm2, %v1598_v21 }
  0x95   : > { %1711 = vmatpush3.msra.mxu0 %v1989_v20  ;;  %1691 = vmatprep.mubr.msk.f32.mxu0 %vm1854_vm1, %v1853_v8 }
  0x96   : > { %v367_v22 = vpop.permute.xlu1 %366 }
  0x97   : > { %v349_v23 = vpop.permute.xlu0 %348  ;;  %vm374_vm5 = vcmp.eq.s32.totalorder %v367_v22, %v340_v17 }
  0x98   : > { %vm354_vm6 = vcmp.eq.s32.totalorder %v349_v23, %v340_v17  ;;  %v1997_v24 = vsel %vm374_vm5, 1.0, %v1853_v8 }
  0x99   : > { %v1599_v25 = vsel %vm354_vm6, 1.0, %v1853_v8  ;;  %1702 = vmatmul.mubr.msk.f32.vlgmr.msra.gmra.mxu1 %vm404_vm2, %v1997_v24  ;;  %vm693_vm14 = vcmp.gt.f32.partialorder %v1997_v24, 0.0 }
  0x9a   : > { %1692 = vmatmul.mubr.msk.f32.gmra.mxu0 %vm404_vm2, %v1599_v25  ;;  %v370_v27 = vpop.permute.xlu1 %369  ;;  %1704 = vmatprep.mubr.msk.f32.mxu1 %vm1854_vm1, %v1853_v8 }
  0x9b   : > { %v388_v28 = vpop.permute.xlu0 %387  ;;  %1694 = vmatprep.mubr.msk.f32.mxu0 %vm1854_vm1, %v1853_v8  ;;  %vm375_vm7 = vcmp.eq.s32.totalorder %v370_v27, %v340_v17 }
  0x9c   : > { %v2009_v29 = vsel %vm375_vm7, 1.0, %v1853_v8  ;;  %vm395_vm8 = vcmp.eq.s32.totalorder %v388_v28, %v340_v17 }
  0x9d   : > { %1705 = vmatmul.mubr.msk.f32.gmra.mxu1 %vm404_vm2, %v2009_v29  ;;  %v1604_v32 = vsel %vm395_vm8, 1.0, %v1853_v8  ;;  %vm694_vm15 = vcmp.gt.f32.partialorder %v2009_v29, 0.0 }
  0x9e   : > { %1695 = vmatmul.mubr.msk.f32.gmra.mxu0 %vm404_vm2, %v1600_v26  ;;  %v373_v30 = vpop.permute.xlu1 %372  ;;  %1707 = vmatprep.mubr.msk.f32.mxu1 %vm1854_vm1, %v1853_v8 }
  0x9f   : > { %v391_v31 = vpop.permute.xlu0 %390  ;;  %1712 = vmatprep.mubr.msk.f32.mxu0 %vm1854_vm1, %v1853_v8  ;;  %vm376_vm10 = vcmp.eq.s32.totalorder %v373_v30, %v340_v17 }
  0xa0   : > { %v2020_v33 = vsel %vm376_vm10, 1.0, %v1853_v8  ;;  %vm396_vm11 = vcmp.eq.s32.totalorder %v391_v31, %v340_v17 }
  0xa1   : > { %1708 = vmatmul.mubr.msk.f32.gmra.mxu1 %vm404_vm2, %v2020_v33  ;;  %v1605_v35 = vsel %vm396_vm11, 1.0, %v1853_v8  ;;  %vm695_vm0 = vcmp.gt.f32.partialorder %v2020_v33, 0.0 }
  0xa2   : > { %1713 = vmatmul.mubr.msk.f32.vlgmr.msra.gmra.mxu0 %vm583_vm9, %v1604_v32 }
  0xa3   : > { %v394_v34 = vpop.permute.xlu0 %393  ;;  %1715 = vmatprep.mubr.msk.f32.mxu0 %vm1854_vm1, %v1853_v8 }
  0xa4   : > { %vm397_vm12 = vcmp.eq.s32.totalorder %v394_v34, %v340_v17 }
  0xa5   : > { %v1606_v36 = vsel %vm397_vm12, 1.0, %v1853_v8 }
  0xa6   : > { %1716 = vmatmul.mubr.msk.f32.gmra.mxu0 %vm583_vm9, %v1605_v35 }
  0xa7   : > { %1718 = vmatprep.mubr.msk.f32.mxu0 %vm1854_vm1, %v1853_v8 }
  0xaa   : > { %1719 = vmatmul.mubr.msk.f32.gmra.mxu0 %vm583_vm9, %v1606_v36 }
 0x154   : > { %v480_v37 = vpop.f32.mrf.mxu0 }
 0x156   : > { %v1690_v38 = vpop.f32.mrf.mxu0 }
 0x159   : > { %v569_v40 = vpop.f32.mrf.mxu1 }
 0x15a   : > { %v485_v39 = vpop.f32.mrf.mxu0  ;;  %v939_v53 = vmul.f32 %v569_v40, %v480_v37 }
 0x15b   : > { %v1703_v42 = vpop.f32.mrf.mxu1 }
 0x15c   : > { %v1693_v41 = vpop.f32.mrf.mxu0  ;;  %v942_v58 = vsel %vm683_vm13, %v939_v53, 0.0 }
 0x15d   : > { %v574_v44 = vpop.f32.mrf.mxu1 }
 0x15e   : > { %v490_v43 = vpop.f32.mrf.mxu0  ;;  %v940_v5 = vmul.f32 %v574_v44, %v485_v39 }
 0x15f   : > { %1741 = vmatprep.subr.mxu0 %v490_v43  ;;  %v1706_v46 = vpop.f32.mrf.mxu1 }
 0x160   : > { %v1696_v45 = vpop.f32.mrf.mxu0  ;;  %1742 = vmatpush3.msra.mxu0 %v490_v43  ;;  %v945_v7 = vsel %vm683_vm13, %v940_v5, 0.0 }
 0x161   : > { %1743 = vmatprep.subr.mxu0 %v485_v39  ;;  %v579_v47 = vpop.f32.mrf.mxu1 }
 0x162   : > { %v659_v48 = vpop.f32.mrf.mxu0  ;;  %1744 = vmatpush3.msra.mxu0 %v485_v39  ;;  %v941_v60 = vmul.f32 %v579_v47, %v490_v43 }
 0x163   : > { %1745 = vmatprep.subr.mxu0 %v480_v37  ;;  %v680_v49 = vmul.f32 %v659_v48, %v569_v40  ;;  %v1709_v50 = vpop.f32.mrf.mxu1  ;;  %v2041_v4 = vmul.f32 %v659_v48, %v480_v37 }
 0x164   : > { %v1714_v51 = vpop.f32.mrf.mxu0  ;;  %1746 = vmatpush3.msra.mxu0 %v480_v37  ;;  %v948_v1 = vsel %vm683_vm13, %v941_v60, 0.0 }
 0x165   : > { %v684_v52 = vsel %vm683_vm13, %v680_v49, 0.0  ;;  %v1193_v11 = vmul.f32 %v2041_v4, %v569_v40 }
 0x166   : > { %685 = vadd.xlane.f32.xlu1 %v684_v52  ;;  %v664_v54 = vpop.f32.mrf.mxu0 }
 0x167   : > { %v681_v55 = vmul.f32 %v664_v54, %v574_v44  ;;  %v2031_v57 = vmul.f32 %v664_v54, %v485_v39  ;;  %v1196_v12 = vsel %vm683_vm13, %v1193_v11, 0.0 }
 0x168   : > { %v1717_v56 = vpop.f32.mrf.mxu0 }
 0x169   : > { %v687_v59 = vsel %vm683_vm13, %v681_v55, 0.0  ;;  %v1194_v3 = vmul.f32 %v2031_v57, %v574_v44 }
 0x16a   : > { %943 = vadd.xlane.f32.xlu1 %v942_v58  ;;  %688 = vadd.xlane.f32.xlu0 %v687_v59  ;;  %v669_v61 = vpop.f32.mrf.mxu0 }
 0x16b   : > { %1721 = vmatprep.subr.mxu1 %v669_v61  ;;  %v2035_v62 = vmul.f32 %v669_v61, %v490_v43  ;;  %v682_v63 = vmul.f32 %v669_v61, %v579_v47  ;;  %v1199_v6 = vsel %vm683_vm13, %v1194_v3, 0.0 }
 0x16c   : > { %v1720_v0 = vpop.f32.mrf.mxu0  ;;  %1722 = vmatpush3.msra.mxu1 %v669_v61 }
 0x16d   : > { %1723 = vmatprep.subr.mxu1 %v664_v54  ;;  %1761 = vmatprep.subr.mxu0 %v2035_v62  ;;  %v690_v2 = vsel %vm683_vm13, %v682_v63, 0.0  ;;  %v1195_v13 = vmul.f32 %v2035_v62, %v579_v47 }
 0x16e   : > { %949 = vadd.xlane.f32.xlu1 %v948_v1  ;;  %1724 = vmatpush3.msra.mxu1 %v664_v54 }
 0x16f   : > { %691 = vadd.xlane.f32.xlu0 %v690_v2  ;;  %1725 = vmatprep.subr.mxu1 %v659_v48  ;;  %v1202_v14 = vsel %vm683_vm13, %v1195_v13, 0.0 }
 0x170   : > { %1726 = vmatpush3.msra.mxu1 %v659_v48 }
 0x172   : > { %1200 = vadd.xlane.f32.xlu1 %v1199_v6 }
 0x173   : > { %946 = vadd.xlane.f32.xlu0 %v945_v7 }
 0x177   : > { %1197 = vadd.xlane.f32.xlu0 %v1196_v12 }
 0x17b   : > { %1203 = vadd.xlane.f32.xlu0 %v1202_v14 }
 0x1ef   : > { %v686_v15 = vpop.xlane.xlu1 %685 }
 0x1f0   : > { %v696_v16 = vsel %vm693_vm14, %v686_v15, -1e+30 }
 0x1f1   : > { %v699_v21 = vsel %vm404_vm2, %v696_v16, -inf }
 0x1f3   : > { %v944_v17 = vpop.xlane.xlu1 %943  ;;  %v689_v18 = vpop.xlane.xlu0 %688 }
 0x1f4   : > { %v697_v19 = vsel %vm694_vm15, %v689_v18, -1e+30  ;;  %v951_v30 = vsel %vm693_vm14, %v944_v17, -1e+30 }
 0x1f5   : > { %v700_v22 = vsel %vm404_vm2, %v697_v19, -inf  ;;  %v954_v38 = vsel %vm404_vm2, %v951_v30, -inf }
 0x1f6   : > { %v702_v23 = vmax.f32 %v699_v21, %v700_v22 }
 0x1f7   : > { %v950_v25 = vpop.xlane.xlu1 %949 }
 0x1f8   : > { %v692_v26 = vpop.xlane.xlu0 %691  ;;  %v953_v35 = vsel %vm695_vm0, %v950_v25, -1e+30 }
 0x1f9   : > { %v698_v27 = vsel %vm695_vm0, %v692_v26, -1e+30  ;;  %v956_v43 = vsel %vm404_vm2, %v953_v35, -inf }
 0x1fa   : > { %v701_v28 = vsel %vm404_vm2, %v698_v27, -inf }
 0x1fb   : > { %v703_v31 = vmax.f32 %v702_v23, %v701_v28  ;;  %v1201_v32 = vpop.xlane.xlu1 %1200 }
 0x1fc   : > { %v947_v34 = vpop.xlane.xlu0 %946  ;;  %v1206_v41 = vsel %vm694_vm15, %v1201_v32, -1e+30 }
 0x1fd   : > { %v704_v36 = vrot.slane %v703_v31, 4  ;;  %v952_v37 = vsel %vm694_vm15, %v947_v34, -1e+30  ;;  %v1209_v48 = vsel %vm404_vm2, %v1206_v41, -inf }
 0x1fe   : > { %v955_v39 = vsel %vm404_vm2, %v952_v37, -inf }
 0x1ff   : > { %v705_v40 = vmax.f32 %v703_v31, %v704_v36  ;;  %v957_v42 = vmax.f32 %v954_v38, %v955_v39 }
 0x200   : > { %v1198_v44 = vpop.xlane.xlu0 %1197 }
 0x201   : > { %v706_v45 = vrot.slane %v705_v40, 2  ;;  %v958_v46 = vmax.f32 %v957_v42, %v956_v43  ;;  %v1205_v47 = vsel %vm693_vm14, %v1198_v44, -1e+30 }
 0x202   : > { %v1208_v49 = vsel %vm404_vm2, %v1205_v47, -inf }
 0x203   : > { %v707_v50 = vmax.f32 %v705_v40, %v706_v45  ;;  %v959_v51 = vrot.slane %v958_v46, 4  ;;  %v1211_v52 = vmax.f32 %v1208_v49, %v1209_v48 }
 0x204   : > { %v1204_v53 = vpop.xlane.xlu0 %1203 }
 0x205   : > { %v708_v54 = vrot.slane %v707_v50, 1  ;;  %v960_v55 = vmax.f32 %v958_v46, %v959_v51  ;;  %v1207_v56 = vsel %vm695_vm0, %v1204_v53, -1e+30 }
 0x206   : > { %v1210_v58 = vsel %vm404_vm2, %v1207_v56, -inf }
 0x207   : > { %v709_v59 = vmax.f32 %v707_v50, %v708_v54  ;;  %v961_v60 = vrot.slane %v960_v55, 2  ;;  %v1212_v61 = vmax.f32 %v1211_v52, %v1210_v58 }
 0x209   : > { %v710_v63 = vsub.f32 %v696_v16, %v709_v59  ;;  %v711_v0 = vsub.f32 %v697_v19, %v709_v59  ;;  %v712_v1 = vsub.f32 %v698_v27, %v709_v59  ;;  %v962_v2 = vmax.f32 %v960_v55, %v961_v60 }
 0x20a   : > { %v1213_v3 = vrot.slane %v1212_v61, 4 }
 0x20b   : > { %v713_v5 = vmul.f32 1.442695, %v710_v63  ;;  %v715_v6 = vmul.f32 1.442695, %v711_v0  ;;  %v717_v7 = vmul.f32 1.442695, %v712_v1 }
 0x20c   : > { %v963_v11 = vrot.slane %v962_v2, 1  ;;  %v1214_v12 = vmax.f32 %v1212_v61, %v1213_v3 }
 0x20d   : > { %1807 = vpow2.f32 %v713_v5 }
 0x20e   : > { %1809 = vpow2.f32 %v715_v6  ;;  %v964_v13 = vmax.f32 %v962_v2, %v963_v11  ;;  %v1215_v14 = vrot.slane %v1214_v12, 2 }
 0x20f   : > { %1811 = vpow2.f32 %v717_v7 }
 0x210   : > { %v965_v15 = vsub.f32 %v951_v30, %v964_v13  ;;  %v966_v17 = vsub.f32 %v952_v37, %v964_v13  ;;  %v967_v18 = vsub.f32 %v953_v35, %v964_v13  ;;  %v1216_v21 = vmax.f32 %v1214_v12, %v1215_v14 }
 0x212   : > { %v968_v22 = vmul.f32 1.442695, %v965_v15  ;;  %v970_v16 = vmul.f32 1.442695, %v966_v17  ;;  %v972_v19 = vmul.f32 1.442695, %v967_v18 }
 0x213   : > { %v1217_v23 = vrot.slane %v1216_v21, 1 }
 0x214   : > { %1813 = vpow2.f32 %v968_v22 }
 0x215   : > { %1815 = vpow2.f32 %v970_v16  ;;  %v1218_v25 = vmax.f32 %v1216_v21, %v1217_v23 }
 0x216   : > { %1817 = vpow2.f32 %v972_v19 }
 0x217   : > { %v1219_v26 = vsub.f32 %v1205_v47, %v1218_v25  ;;  %v1220_v27 = vsub.f32 %v1206_v41, %v1218_v25  ;;  %v1221_v28 = vsub.f32 %v1207_v56, %v1218_v25 }
 0x219   : > { %v1222_v31 = vmul.f32 1.442695, %v1219_v26  ;;  %v1224_v32 = vmul.f32 1.442695, %v1220_v27  ;;  %v1226_v34 = vmul.f32 1.442695, %v1221_v28 }
 0x21a   : > { %v1808_v36 = vpop.eup %1807 }
 0x21b   : > { %v1810_v38 = vpop.eup %1809  ;;  %1819 = vpow2.f32 %v1222_v31  ;;  %v719_v30 = vsel %vm693_vm14, %v1808_v36, 0.0 }
 0x21c   : > { %v1812_v35 = vpop.eup %1811  ;;  %1821 = vpow2.f32 %v1224_v32  ;;  %v720_v37 = vsel %vm694_vm15, %v1810_v38, 0.0  ;;  %v722_v39 = vsel %vm404_vm2, %v719_v30, 0.0 }
 0x21d   : > { %1823 = vpow2.f32 %v1226_v34  ;;  %v721_v40 = vsel %vm695_vm0, %v1812_v35, 0.0  ;;  %v723_v41 = vsel %vm404_vm2, %v720_v37, 0.0 }
 0x21e   : > { %v724_v42 = vadd.f32 %v723_v41, %v722_v39  ;;  %v725_v43 = vsel %vm404_vm2, %v721_v40, 0.0 }
 0x220   : > { %v726_v44 = vadd.f32 %v725_v43, %v724_v42 }
 0x221   : > { %v1814_v45 = vpop.eup %1813 }
 0x222   : > { %v1816_v46 = vpop.eup %1815  ;;  %v727_v47 = vrot.slane %v726_v44, 4  ;;  %v974_v48 = vsel %vm693_vm14, %v1814_v45, 0.0 }
 0x223   : > { %v1818_v49 = vpop.eup %1817  ;;  %v975_v50 = vsel %vm694_vm15, %v1816_v46, 0.0  ;;  %v977_v51 = vsel %vm404_vm2, %v974_v48, 0.0  ;;  %v678_v46 = vld [vmem:[%s1916_s16 + $0x10] sm:$0xff] }
 0x224   : > { %v728_v52 = vadd.f32 %v727_v47, %v726_v44  ;;  %v976_v53 = vsel %vm695_vm0, %v1818_v49, 0.0  ;;  %v978_v54 = vsel %vm404_vm2, %v975_v50, 0.0  ;;  %v677_v47 = vld [vmem:[%s1916_s16 + $0x8] sm:$0xff] }
 0x225   : > { %v979_v55 = vadd.f32 %v978_v54, %v977_v51  ;;  %v980_v58 = vsel %vm404_vm2, %v976_v53, 0.0  ;;  %v1452_v54 = vld [vmem:[%s1921_s19] sm:$0xff] }
 0x226   : > { %v729_v56 = vrot.slane %v728_v52, 2 }
 0x227   : > { %v981_v59 = vadd.f32 %v980_v58, %v979_v55  ;;  %v937_v58 = vld [vmem:[%s1916_s16 + $0x30] sm:$0xff] }
 0x228   : > { %v1820_v60 = vpop.eup %1819  ;;  %v730_v61 = vadd.f32 %v729_v56, %v728_v52  ;;  %v1454_v52 = vld [vmem:[%s1921_s19 + $0x10] sm:$0xff] }
 0x229   : > { %v1822_v63 = vpop.eup %1821  ;;  %v982_v0 = vrot.slane %v981_v59, 4  ;;  %v1228_v1 = vsel %vm693_vm14, %v1820_v60, 0.0 }
 0x22a   : > { %v1824_v2 = vpop.eup %1823  ;;  %v731_v3 = vrot.slane %v730_v61, 1  ;;  %v1229_v5 = vsel %vm694_vm15, %v1822_v63, 0.0  ;;  %v1231_v6 = vsel %vm404_vm2, %v1228_v1, 0.0  ;;  %v1191_v63 = vld [vmem:[%s1916_s16 + $0x50] sm:$0xff] }
 0x22b   : > { %v983_v7 = vadd.f32 %v982_v0, %v981_v59  ;;  %v1230_v11 = vsel %vm695_vm0, %v1824_v2, 0.0  ;;  %v1232_v12 = vsel %vm404_vm2, %v1229_v5, 0.0  ;;  %v936_v59 = vld [vmem:[%s1916_s16 + $0x28] sm:$0xff] }
 0x22c   : > { %v732_v13 = vadd.f32 %v731_v3, %v730_v61  ;;  %v1233_v14 = vadd.f32 %v1232_v12, %v1231_v6  ;;  %v1234_v17 = vsel %vm404_vm2, %v1230_v11, 0.0  ;;  %vm770_vm2 = vcmask 195584   ;;  %v1190_v0 = vld [vmem:[%s1916_s16 + $0x48] sm:$0xff]  ;;  %v1451_v6 = vld [vmem:[%s2175_s8] sm:$0xff] }
 0x22d   : > { %v984_v15 = vrot.slane %v983_v7, 2 }
 0x22e   : > { %v733_v24 = vmax.f32 %v732_v13, 1e-30  ;;  %v1235_v18 = vadd.f32 %v1234_v17, %v1233_v14 }
 0x22f   : > { %v985_v21 = vadd.f32 %v984_v15, %v983_v7 }
 0x230   : > { %1825 = vrcp.f32 %v733_v24  ;;  %v1236_v22 = vrot.slane %v1235_v18, 4 }
 0x231   : > { %v986_v29 = vrot.slane %v985_v21, 1 }
 0x232   : > { %v1237_v16 = vadd.f32 %v1236_v22, %v1235_v18 }
 0x233   : > { %v987_v19 = vadd.f32 %v986_v29, %v985_v21 }
 0x234   : > { %v1238_v23 = vrot.slane %v1237_v16, 2 }
 0x235   : > { %v988_v25 = vmax.f32 %v987_v19, 1e-30 }
 0x236   : > { %v1239_v26 = vadd.f32 %v1238_v23, %v1237_v16 }
 0x237   : > { %1827 = vrcp.f32 %v988_v25 }
 0x238   : > { %v1240_v33 = vrot.slane %v1239_v26, 1 }
 0x23a   : > { %v1241_v27 = vadd.f32 %v1240_v33, %v1239_v26 }
 0x23c   : > { %v1242_v28 = vmax.f32 %v1241_v27, 1e-30 }
 0x23d   : > { %v1826_v31 = vpop.eup %1825 }
 0x23e   : > { %v735_v32 = vmul.f32 %v1826_v31, %v719_v30  ;;  %v736_v34 = vmul.f32 %v1826_v31, %v720_v37  ;;  %v737_v36 = vmul.f32 %v1826_v31, %v721_v40  ;;  %1829 = vrcp.f32 %v1242_v28  ;;  %v679_v30 = vld [vmem:[%s1916_s16 + $0x18] sm:$0xff] }
 0x23f   : > { %1730 = vmatprep.subr.mxu1 %v679_v30 }
 0x240   : > { %738 = vxpose.xlu1.b32.start [1/3] (short) (narrow) %v735_v32, 16 }
 0x244   : > { %v1828_v38 = vpop.eup %1827  ;;  %739 = vxpose.xlu1.b32.cont [2/3] (short) (narrow) %v736_v34, 16 }
 0x245   : > { %v990_v35 = vmul.f32 %v1828_v38, %v974_v48  ;;  %v991_v39 = vmul.f32 %v1828_v38, %v975_v50  ;;  %v992_v41 = vmul.f32 %v1828_v38, %v976_v53  ;;  %v1453_v53 = vld [vmem:[%s1921_s19 + $0x8] sm:$0xff] }
 0x247   : > { %993 = vxpose.xlu0.b32.start [1/3] (short) (narrow) %v990_v35, 16 }
 0x248   : > { %740 = vxpose.xlu1.b32.end [3/3] (short) (narrow) %v737_v36, 16 }
 0x24b   : > { %v1830_v42 = vpop.eup %1829  ;;  %994 = vxpose.xlu0.b32.cont [2/3] (short) (narrow) %v991_v39, 16 }
 0x24c   : > { %v1244_v43 = vmul.f32 %v1830_v42, %v1228_v1  ;;  %v1245_v44 = vmul.f32 %v1830_v42, %v1229_v5  ;;  %v1246_v45 = vmul.f32 %v1830_v42, %v1230_v11  ;;  %v1189_v1 = vld [vmem:[%s1916_s16 + $0x40] sm:$0xff] }
 0x24f   : > { %995 = vxpose.xlu0.b32.end [3/3] (short) (narrow) %v992_v41, 16 }
 0x253   : > { %1247 = vxpose.xlu0.b32.start [1/3] (short) (narrow) %v1244_v43, 16 }
 0x257   : > { %1248 = vxpose.xlu0.b32.cont [2/3] (short) (narrow) %v1245_v44, 16 }
 0x25b   : > { %1249 = vxpose.xlu0.b32.end [3/3] (short) (narrow) %v1246_v45, 16 }
 0x2bc   : > { %v754_v37 = vpop.trf.xlu1 }
 0x2bd   : > { %1727 = vmatprep.mubr.msk.f32.mxu1 %vm770_vm2, %v754_v37 }
 0x2c0   : > { %v755_v40 = vpop.trf.xlu1 }
 0x2c1   : > { %1728 = vmatmul.mubr.msk.f32.vlgmr.msra.gmra.mxu1 %vm770_vm2, %v755_v40 }
 0x2c2   : > { %1731 = vmatpush3.msra.mxu1 %v679_v30 }
 0x2c3   : > { %v1009_v48 = vpop.trf.xlu0  ;;  %1732 = vmatprep.subr.mxu1 %v678_v46 }
 0x2c4   : > { %1747 = vmatprep.mubr.msk.f32.mxu0 %vm770_vm2, %v1009_v48  ;;  %1733 = vmatpush3.msra.mxu1 %v678_v46 }
 0x2c5   : > { %1734 = vmatprep.subr.mxu1 %v677_v47 }
 0x2c6   : > { %1735 = vmatpush3.msra.mxu1 %v677_v47 }
 0x2c7   : > { %v1010_v49 = vpop.trf.xlu0 }
 0x2c8   : > { %1748 = vmatmul.mubr.msk.f32.vlgmr.msra.gmra.mxu0 %vm770_vm2, %v1010_v49 }
 0x2c9   : > { %1762 = vmatpush3.msra.mxu0 %v2035_v62  ;;  %v676_v62 = vld [vmem:[%s1916_s16] sm:$0xff] }
 0x2ca   : > { %1763 = vmatprep.subr.mxu0 %v2031_v57  ;;  %1736 = vmatprep.subr.mxu1 %v676_v62 }
 0x2cb   : > { %1764 = vmatpush3.msra.mxu0 %v2031_v57  ;;  %1737 = vmatpush3.msra.mxu1 %v676_v62  ;;  %v938_v57 = vld [vmem:[%s1916_s16 + $0x38] sm:$0xff] }
 0x2cc   : > { %1765 = vmatprep.subr.mxu0 %v2041_v4  ;;  %1750 = vmatprep.subr.mxu1 %v938_v57 }
 0x2cd   : > { %1766 = vmatpush3.msra.mxu0 %v2041_v4  ;;  %v1455_v4 = vld [vmem:[%s1921_s19 + $0x18] sm:$0xff] }
 0x2ce   : > { %1781 = vmatprep.subr.mxu0 %v1853_v8 }
 0x2cf   : > { %v1263_v50 = vpop.trf.xlu0 }
 0x2d0   : > { %1767 = vmatprep.mubr.msk.f32.mxu0 %vm770_vm2, %v1263_v50 }
 0x2d3   : > { %v1264_v51 = vpop.trf.xlu0 }
 0x2d4   : > { %1768 = vmatmul.mubr.msk.f32.vlgmr.msra.gmra.mxu0 %vm770_vm2, %v1264_v51 }
 0x2d5   : > { %1789 = vmatprep.mubr.msk.f32.mxu0 %vm1854_vm1, %v1853_v8  ;;  %1782 = vmatpush3.msra.mxu0 %v1455_v4 }
 0x2d6   : > { %1783 = vmatprep.subr.mxu0 %v1853_v8 }
 0x2d7   : > { %1784 = vmatpush3.msra.mxu0 %v1454_v52 }
 0x2d8   : > { %1785 = vmatprep.subr.mxu0 %v1853_v8 }
 0x2d9   : > { %1786 = vmatpush3.msra.mxu0 %v1453_v53 }
 0x2da   : > { %1787 = vmatprep.subr.mxu0 %v1853_v8  ;;  %v935_v8 = vld [vmem:[%s1916_s16 + $0x20] sm:$0xff] }
 0x2db   : > { %1788 = vmatpush3.msra.mxu0 %v1452_v54 }
 0x2dc   : > { %1790 = vmatmul.mubr.msk.f32.vlgmr.msra.gmra.mxu0 %vm683_vm13, %v1989_v20  ;;  %v1192_v20 = vld [vmem:[%s1916_s16 + $0x58] sm:$0xff] }
 0x381   : > { %v1729_v55 = vpop.f32.mrf.mxu1 }
 0x383   : > { %v843_v56 = vpop.f32.mrf.mxu1 }
 0x384   : > { %1738 = vmatprep.mubr.msk.f32.mxu1 %vm683_vm13, %v843_v56 }
 0x385   : > { %1739 = vmatmul.mubr.msk.f32.vlgmr.msra.gmra.mxu1 %vm683_vm13, %v1729_v55 }
 0x386   : > { %1751 = vmatpush3.msra.mxu1 %v938_v57 }
 0x387   : > { %1752 = vmatprep.subr.mxu1 %v937_v58 }
 0x388   : > { %1753 = vmatpush3.msra.mxu1 %v937_v58  ;;  %v1749_v60 = vpop.f32.mrf.mxu0 }
 0x389   : > { %1754 = vmatprep.subr.mxu1 %v936_v59 }
 0x38a   : > { %1755 = vmatpush3.msra.mxu1 %v936_v59  ;;  %v1097_v61 = vpop.f32.mrf.mxu0 }
 0x38b   : > { %1756 = vmatprep.subr.mxu1 %v935_v8  ;;  %1758 = vmatprep.mubr.msk.f32.mxu1 %vm683_vm13, %v1097_v61 }
 0x38c   : > { %1757 = vmatpush3.msra.mxu1 %v935_v8 }
 0x38d   : > { %1759 = vmatmul.mubr.msk.f32.vlgmr.msra.gmra.mxu1 %vm683_vm13, %v1749_v60  ;;  %1770 = vmatprep.subr.mxu1 %v1192_v20 }
 0x38e   : > { %1771 = vmatpush3.msra.mxu1 %v1192_v20 }
 0x38f   : > { %1772 = vmatprep.subr.mxu1 %v1191_v63 }
 0x390   : > { %1773 = vmatpush3.msra.mxu1 %v1191_v63 }
 0x391   : > { %1774 = vmatprep.subr.mxu1 %v1190_v0 }
 0x392   : > { %1775 = vmatpush3.msra.mxu1 %v1190_v0 }
 0x393   : > { %1776 = vmatprep.subr.mxu1 %v1189_v1 }
 0x394   : > { %v1769_v2 = vpop.f32.mrf.mxu0  ;;  %1777 = vmatpush3.msra.mxu1 %v1189_v1 }
 0x396   : > { %v1351_v3 = vpop.f32.mrf.mxu0 }
 0x397   : > { %1778 = vmatprep.mubr.msk.f32.mxu1 %vm683_vm13, %v1351_v3 }
 0x398   : > { %1779 = vmatmul.mubr.msk.f32.vlgmr.msra.gmra.mxu1 %vm683_vm13, %v1769_v2 }
 0x39c   : > { %v1525_v5 = vpop.f32.mrf.mxu0 }
 0x39d   : > { %v1529_v11 = vadd.f32 %v1525_v5, %v1451_v6 }
 0x39e   : > { %v1791_v7 = vpop.f32.mrf.mxu0 }
 0x39f   : > { %1530 = vst.msk [vmem:[%s2175_s8] sm:$0xff] %vm683_vm13, %v1529_v11 }
 0x445   : > { %v1740_v12 = vpop.f32.mrf.mxu1 }
 0x446   : > { %1831 = vtanh.f32 %v1740_v12 }
 0x447   : > { %v924_v13 = vpop.f32.mrf.mxu1 }
 0x448   : > { %1833 = vtanh.f32 %v924_v13 }
 0x44d   : > { %v1760_v14 = vpop.f32.mrf.mxu1 }
 0x44e   : > { %1835 = vtanh.f32 %v1760_v14 }
 0x44f   : > { %v1178_v15 = vpop.f32.mrf.mxu1 }
 0x450   : > { %1837 = vtanh.f32 %v1178_v15 }
 0x453   : > { %v1832_v18 = vpop.eup %1831 }
 0x454   : > { %v1444_v29 = vadd.f32 %v1832_v18, %v1954_v9 }
 0x455   : > { %v1834_v21 = vpop.eup %1833 }
 0x456   : > { %v1443_v19 = vadd.f32 %v1834_v21, %v1962_v10 }
 0x458   : > { %v1780_v17 = vpop.f32.mrf.mxu1 }
 0x459   : > { %1839 = vtanh.f32 %v1780_v17 }
 0x45a   : > { %v1432_v24 = vpop.f32.mrf.mxu1 }
 0x45b   : > { %1841 = vtanh.f32 %v1432_v24  ;;  %v1836_v22 = vpop.eup %1835 }
 0x45c   : > { %v1446_v23 = vadd.f32 %v1836_v22, %v1444_v29 }
 0x45d   : > { %v1838_v16 = vpop.eup %1837 }
 0x45e   : > { %v1445_v26 = vadd.f32 %v1838_v16, %v1443_v19 }
 0x466   : > { %v1840_v25 = vpop.eup %1839 }
 0x467   : > { %v1448_v33 = vadd.f32 %v1840_v25, %v1446_v23 }
 0x468   : > { %v1842_v27 = vpop.eup %1841 }
 0x469   : > { %1450 = vst.msk [vmem:[%s2174_s7 + $0x8] sm:$0xff] %vm683_vm13, %v1448_v33  ;;  %v1447_v28 = vadd.f32 %v1842_v27, %v1445_v26 }
 0x46b   : > { %1449 = vst.msk [vmem:[%s2174_s7] sm:$0xff] %vm683_vm13, %v1447_v28 }
 0x46c PF: > { %s19_s27 = sadd.s32 1, %s1849_s27  }
 0x46d   : > { %p16_p5 = scmp.ge.s32.totalorder %s19_s27, 4  }
 0x46f   :  { %18 = sbr.rel (!%p16_p5) target bundleno = 1 (0x1), region = 92 }

</bundles_post_ra>
